<compile_context>
chip_gen: v7x
topology: tpu7x:2x2x1
jax: 0.10.0
libtpu: 0.0.40
codegen_flags: <defaults>
</compile_context>

<pallas_src>
import functools

import jax
import jax.numpy as jnp
from jax.experimental import pallas as pl
from jax.experimental.pallas import tpu as pltpu

# ---------------- small, deterministic config ----------------
IMAGE_SIZE   = 16
PATCH_SIZE   = 8
NUM_CHANNELS = 4
HIDDEN       = 64            # embed_dim / hidden_size
HEADS        = 2
HEAD_DIM     = HIDDEN // HEADS
INTER        = 128           # intermediate_size
NUM_LAYERS   = 2
LN_EPS       = 1e-5
PAD_TP       = 4             # pad_tp_size in Step3VisionEmbeddings
NUM_PATCHES  = (IMAGE_SIZE // PATCH_SIZE) ** 2          # 4
SEQ          = NUM_PATCHES + 1 + (PAD_TP - 1)           # 8
PATCH_K      = NUM_CHANNELS * PATCH_SIZE * PATCH_SIZE   # 256
SLABW        = 3 * HIDDEN                               # 192 (slab lane width)
NEG_INF      = -1e9

W_LAYER_ROWS = 3 * HIDDEN + INTER       # wqkv(64) + wo(64) + w1(64) + w2(128)
P_LAYER_ROWS = 8                        # bqkv, bo, g1, be1, b1, b2, g2, be2


def _padw(a):
    """Pad a 2-D array on the lane axis up to the common slab width."""
    return jnp.pad(a, ((0, 0), (0, SLABW - a.shape[1])))


def _layer_norm(x, gamma, beta):
    mu = jnp.mean(x, axis=-1, keepdims=True)
    var = jnp.mean(jnp.square(x - mu), axis=-1, keepdims=True)
    return (x - mu) * jax.lax.rsqrt(var + LN_EPS) * gamma + beta


# ---------------- fused forward: one pallas_call ----------------
def _make_kernel(batch):
    rows = batch * SEQ
    f32, bf16 = jnp.float32, jnp.bfloat16
    lp_base = 2 * rows        # row offset of per-layer f32 params in p_slab

    def kernel(x_ref, w_ref, p_ref, o_ref):
        # ---- patch embedding (stride==kernel Conv2d as one MXU matmul) + add.
        # Pad/cls rows of x are zero, so the additive row supplies (cls+pos0)
        # there; patch rows pick up (pos_patch + conv bias) from the same add.
        h = jnp.dot(x_ref[...], w_ref[0:PATCH_K, 0:HIDDEN],
                    preferred_element_type=f32) + p_ref[0:rows, 0:HIDDEN]

        # block-diagonal additive mask: batches never attend to each other
        mask = p_ref[rows:2 * rows, 0:rows]                       # (rows, rows)

        # ---- encoder layers (statically unrolled; all weights VMEM-resident)
        for l in range(NUM_LAYERS):
            wb = PATCH_K + l * W_LAYER_ROWS
            wqkv = w_ref[wb:wb + HIDDEN, 0:3 * HIDDEN]                     # (64,192)
            wo   = w_ref[wb + HIDDEN:wb + 2 * HIDDEN, 0:HIDDEN]            # (64,64)
            w1   = w_ref[wb + 2 * HIDDEN:wb + 3 * HIDDEN, 0:INTER]         # (64,128)
            w2   = w_ref[wb + 3 * HIDDEN:wb + 3 * HIDDEN + INTER, 0:HIDDEN]

            lp   = p_ref[lp_base + P_LAYER_ROWS * l:
                         lp_base + P_LAYER_ROWS * (l + 1), :]              # (8,192)
            bqkv = lp[0:1, 0:3 * HIDDEN]
            bo   = lp[1:2, 0:HIDDEN]
            g1   = lp[2:3, 0:HIDDEN]
            be1  = lp[3:4, 0:HIDDEN]
            b1   = lp[4:5, 0:INTER]
            b2   = lp[5:6, 0:HIDDEN]
            g2   = lp[6:7, 0:HIDDEN]
            be2  = lp[7:8, 0:HIDDEN]

            # ---- fused qkv projection: ONE (rows,64)@(64,192) matmul ----
            qkv = jnp.dot(h.astype(bf16), wqkv, preferred_element_type=f32) + bqkv

            # ---- SDPA over all batches at once, per head ----
            heads_out = []
            for hd in range(HEADS):
                c = hd * HEAD_DIM
                qb = qkv[:, c:c + HEAD_DIM].astype(bf16)                   # (rows,32)
                kb = qkv[:, HIDDEN + c:HIDDEN + c + HEAD_DIM].astype(bf16)
                vb = qkv[:, 2 * HIDDEN + c:2 * HIDDEN + c + HEAD_DIM].astype(bf16)
                # q already scaled by head_dim^-0.5 (folded into wqkv/bqkv);
                # contract on dim 1 of both (no materialized K transpose).
                s = jax.lax.dot_general(qb, kb, (((1,), (1,)), ((), ())),
                                        preferred_element_type=f32) + mask
                s = s - jnp.max(s, axis=-1, keepdims=True)
                p = jnp.exp(s)                                             # f32
                denom = jnp.sum(p, axis=-1, keepdims=True)
                pv = jnp.dot(p.astype(bf16), vb, preferred_element_type=f32)
                heads_out.append(pv / denom)                               # exact div
            attn_cat = jnp.concatenate(heads_out, axis=-1).astype(bf16)    # (rows,64)
            attn = jnp.dot(attn_cat, wo, preferred_element_type=f32) + bo

            # residual: x + LayerNorm1(attn(x))   (matches reference layer)
            h = h + _layer_norm(attn, g1, be1)

            # MLP with quick_gelu; residual: x + LayerNorm2(mlp(x))
            f = jnp.dot(h.astype(bf16), w1, preferred_element_type=f32) + b1
            f = f * jax.nn.sigmoid(1.702 * f)                              # quick_gelu
            g = jnp.dot(f.astype(bf16), w2, preferred_element_type=f32) + b2
            h = h + _layer_norm(g, g2, be2)

        o_ref[...] = h

    return kernel


def fused_vit_pallas(x_padded, w_slab, p_slab, batch):
    rows = batch * SEQ
    kernel = _make_kernel(batch)

    def full_spec(a):
        nd = a.ndim
        return pl.BlockSpec(a.shape, lambda i, _n=nd: (0,) * _n)

    return pl.pallas_call(
        kernel,
        out_shape=jax.ShapeDtypeStruct((rows, HIDDEN), jnp.float32),
        grid=(1,),
        in_specs=[full_spec(x_padded), full_spec(w_slab), full_spec(p_slab)],
        out_specs=pl.BlockSpec((rows, HIDDEN), lambda i: (0, 0)),
        compiler_params=pltpu.CompilerParams(
            dimension_semantics=("arbitrary",)),
    )(x_padded, w_slab, p_slab)


# ---------------- glue: pixel rearrangement + slab assembly ----------------
def step3_vision_transformer_forward(pixel_values, params):
    B = pixel_values.shape[0]
    P, C = PATCH_SIZE, NUM_CHANNELS
    nH = IMAGE_SIZE // P
    rows = B * SEQ

    # NCHW -> patch-major rows [B, NP, C*P*P] (matches Conv2d weight flattening)
    x = pixel_values.reshape(B, C, nH, P, nH, P)
    x = x.transpose(0, 2, 4, 1, 3, 5).reshape(B, NUM_PATCHES, PATCH_K)
    # prepend PAD_TP zero rows per batch (cls + 3 pad copies come from emb_add)
    x_padded = jnp.concatenate(
        [jnp.zeros((B, PAD_TP, PATCH_K), jnp.float32), x], axis=1
    ).reshape(rows, PATCH_K).astype(jnp.bfloat16)

    # f32 slab: [emb_add (rows); block-diag mask (rows); per-layer bias/LN rows]
    emb_add = jnp.tile(params["emb_seq"], (B, 1))                      # (rows, D)
    bid = jnp.arange(rows) // SEQ
    mask = jnp.where(bid[:, None] == bid[None, :], 0.0, NEG_INF).astype(jnp.float32)
    p_slab = jnp.concatenate(
        [_padw(emb_add), _padw(mask), params["layer_f32"]], axis=0)

    out2d = fused_vit_pallas(x_padded, params["w_slab"], p_slab, B)
    return out2d.reshape(B, SEQ, HIDDEN)


# ---------------- deterministic parameter init (packed slabs) ----------------
def init_params(key):
    ks = iter(jax.random.split(key, 64))
    nrm = lambda shape, s=0.02: s * jax.random.normal(next(ks), shape, jnp.float32)
    scale = HEAD_DIM ** -0.5

    # --- embeddings ---
    cls     = nrm((1, HIDDEN), 1.0)                   # class_embedding
    patch_w = nrm((PATCH_K, HIDDEN))                  # Conv2d (D,C,P,P) flattened (C*P*P, D)
    patch_b = nrm((1, HIDDEN))
    pos_emb = nrm((NUM_PATCHES + 1, HIDDEN))          # position_embedding.weight
    # get_abs_pos: src_size == tgt_size for this config -> identity path.
    # TODO(synk): bicubic+antialias interpolation path (src_size != tgt_size) not implemented.
    emb_seq = jnp.concatenate(
        [jnp.broadcast_to(cls + pos_emb[0:1], (PAD_TP, HIDDEN)),   # pad + cls rows
         pos_emb[1:] + patch_b],                                   # patch rows
        axis=0)                                                    # (SEQ, D)

    w_rows, f32_rows = [_padw(patch_w)], []
    for _ in range(NUM_LAYERS):
        wq, wk, wv = nrm((HIDDEN, HIDDEN)), nrm((HIDDEN, HIDDEN)), nrm((HIDDEN, HIDDEN))
        bq, bk, bv = nrm((1, HIDDEN)), nrm((1, HIDDEN)), nrm((1, HIDDEN))
        wo, bo = nrm((HIDDEN, HIDDEN)), nrm((1, HIDDEN))
        w1, b1 = nrm((HIDDEN, INTER)), nrm((1, INTER))
        w2, b2 = nrm((INTER, HIDDEN)), nrm((1, HIDDEN))
        g1  = jnp.ones((1, HIDDEN), jnp.float32)
        be1 = jnp.zeros((1, HIDDEN), jnp.float32)
        g2  = jnp.ones((1, HIDDEN), jnp.float32)
        be2 = jnp.zeros((1, HIDDEN), jnp.float32)

        # fold the 1/sqrt(head_dim) attention scale into q weights and bias
        wqkv = jnp.concatenate([wq * scale, wk, wv], axis=1)       # (D, 3D)
        bqkv = jnp.concatenate([bq * scale, bk, bv], axis=1)       # (1, 3D)

        w_rows += [wqkv, _padw(wo), _padw(w1), _padw(w2)]
        f32_rows += [bqkv, _padw(bo), _padw(g1), _padw(be1),
                     _padw(b1), _padw(b2), _padw(g2), _padw(be2)]

    return {
        "w_slab":    jnp.concatenate(w_rows, axis=0).astype(jnp.bfloat16),  # (896, 192)
        "layer_f32": jnp.concatenate(f32_rows, axis=0),                     # (16, 192)
        "emb_seq":   emb_seq,                                               # (SEQ, D)
    }


if __name__ == "__main__":
    key = jax.random.PRNGKey(0)
    k_params, k_px = jax.random.split(key)
    params = init_params(k_params)
    pixel_values = jax.random.normal(
        k_px, (2, NUM_CHANNELS, IMAGE_SIZE, IMAGE_SIZE), jnp.float32)

    fwd = jax.jit(step3_vision_transformer_forward)
    out = fwd(pixel_values, params)
    out = jax.block_until_ready(out)
    assert out.shape == (2, SEQ, HIDDEN), out.shape
    assert bool(jnp.all(jnp.isfinite(out)))
    print("KERNEL_OK")
</pallas_src>

<mosaic_0001>
module attributes {stable_mosaic.version = 11 : i64} {
  func.func @kernel(%arg0: i32, %arg1: memref<16x256xbf16, #tpu.memory_space<vmem>>, %arg2: memref<896x192xbf16, #tpu.memory_space<vmem>>, %arg3: memref<48x192xf32, #tpu.memory_space<vmem>>, %arg4: memref<16x64xf32, #tpu.memory_space<vmem>>) attributes {dimension_semantics = [#tpu.dimension_semantics<arbitrary>], iteration_bounds = array<i64: 1>, scalar_prefetch = 0 : i64, scratch_operands = 0 : i64, tpu.core_type = #tpu.core_type<tc>, window_params = [{pipeline_mode = #tpu.pipeline_mode<synchronous>, transform_indices = @transform_0, window_bounds = array<i64: 16, 256>}, {pipeline_mode = #tpu.pipeline_mode<synchronous>, transform_indices = @transform_1, window_bounds = array<i64: 896, 192>}, {pipeline_mode = #tpu.pipeline_mode<synchronous>, transform_indices = @transform_2, window_bounds = array<i64: 48, 192>}, {pipeline_mode = #tpu.pipeline_mode<synchronous>, transform_indices = @transform_3, window_bounds = array<i64: 16, 64>}]} {
    %c0 = arith.constant 0 : index
    %c0_0 = arith.constant 0 : index
    %0 = vector.load %arg1[%c0, %c0_0] : memref<16x256xbf16, #tpu.memory_space<vmem>>, vector<16x256xbf16>
    %c0_1 = arith.constant 0 : index
    %c0_2 = arith.constant 0 : index
    %1 = vector.load %arg2[%c0_1, %c0_2] : memref<896x192xbf16, #tpu.memory_space<vmem>>, vector<256x64xbf16>
    %cst = arith.constant dense<0.000000e+00> : vector<16x64xf32>
    %2 = tpu.matmul %0, %1, %cst {dimension_numbers = #tpu.dot_dimension_numbers<[1], [0], [0], [1], [0, 0, 1, 1], [], []>} : vector<16x256xbf16>, vector<256x64xbf16>, vector<16x64xf32> -> vector<16x64xf32>
    %c0_3 = arith.constant 0 : index
    %c0_4 = arith.constant 0 : index
    %3 = vector.load %arg3[%c0_3, %c0_4] : memref<48x192xf32, #tpu.memory_space<vmem>>, vector<16x64xf32>
    %4 = arith.addf %2, %3 : vector<16x64xf32>
    %c16 = arith.constant 16 : index
    %c0_5 = arith.constant 0 : index
    %5 = vector.load %arg3[%c16, %c0_5] : memref<48x192xf32, #tpu.memory_space<vmem>>, vector<16x16xf32>
    %c256 = arith.constant 256 : index
    %c0_6 = arith.constant 0 : index
    %6 = vector.load %arg2[%c256, %c0_6] : memref<896x192xbf16, #tpu.memory_space<vmem>>, vector<64x192xbf16>
    %c320 = arith.constant 320 : index
    %c0_7 = arith.constant 0 : index
    %7 = vector.load %arg2[%c320, %c0_7] : memref<896x192xbf16, #tpu.memory_space<vmem>>, vector<64x64xbf16>
    %c384 = arith.constant 384 : index
    %c0_8 = arith.constant 0 : index
    %8 = vector.load %arg2[%c384, %c0_8] : memref<896x192xbf16, #tpu.memory_space<vmem>>, vector<64x128xbf16>
    %c448 = arith.constant 448 : index
    %c0_9 = arith.constant 0 : index
    %9 = vector.load %arg2[%c448, %c0_9] : memref<896x192xbf16, #tpu.memory_space<vmem>>, vector<128x64xbf16>
    %c32 = arith.constant 32 : index
    %c0_10 = arith.constant 0 : index
    %10 = vector.load %arg3[%c32, %c0_10] : memref<48x192xf32, #tpu.memory_space<vmem>>, vector<8x192xf32>
    %11 = vector.extract_strided_slice %10 {offsets = [0, 0], sizes = [1, 192], strides = [1, 1]} : vector<8x192xf32> to vector<1x192xf32>
    %12 = vector.extract_strided_slice %10 {offsets = [1, 0], sizes = [1, 64], strides = [1, 1]} : vector<8x192xf32> to vector<1x64xf32>
    %13 = vector.extract_strided_slice %10 {offsets = [2, 0], sizes = [1, 64], strides = [1, 1]} : vector<8x192xf32> to vector<1x64xf32>
    %14 = vector.extract_strided_slice %10 {offsets = [3, 0], sizes = [1, 64], strides = [1, 1]} : vector<8x192xf32> to vector<1x64xf32>
    %15 = vector.extract_strided_slice %10 {offsets = [4, 0], sizes = [1, 128], strides = [1, 1]} : vector<8x192xf32> to vector<1x128xf32>
    %16 = vector.extract_strided_slice %10 {offsets = [5, 0], sizes = [1, 64], strides = [1, 1]} : vector<8x192xf32> to vector<1x64xf32>
    %17 = vector.extract_strided_slice %10 {offsets = [6, 0], sizes = [1, 64], strides = [1, 1]} : vector<8x192xf32> to vector<1x64xf32>
    %18 = vector.extract_strided_slice %10 {offsets = [7, 0], sizes = [1, 64], strides = [1, 1]} : vector<8x192xf32> to vector<1x64xf32>
    %19 = arith.truncf %4 : vector<16x64xf32> to vector<16x64xbf16>
    %cst_11 = arith.constant dense<0.000000e+00> : vector<16x192xf32>
    %20 = tpu.matmul %19, %6, %cst_11 {dimension_numbers = #tpu.dot_dimension_numbers<[1], [0], [0], [1], [0, 0, 1, 1], [], []>} : vector<16x64xbf16>, vector<64x192xbf16>, vector<16x192xf32> -> vector<16x192xf32>
    %21 = vector.broadcast %11 : vector<1x192xf32> to vector<16x192xf32>
    %22 = arith.addf %20, %21 : vector<16x192xf32>
    %23 = vector.extract_strided_slice %22 {offsets = [0, 0], sizes = [16, 32], strides = [1, 1]} : vector<16x192xf32> to vector<16x32xf32>
    %24 = arith.truncf %23 : vector<16x32xf32> to vector<16x32xbf16>
    %25 = vector.extract_strided_slice %22 {offsets = [0, 64], sizes = [16, 32], strides = [1, 1]} : vector<16x192xf32> to vector<16x32xf32>
    %26 = arith.truncf %25 : vector<16x32xf32> to vector<16x32xbf16>
    %27 = vector.extract_strided_slice %22 {offsets = [0, 128], sizes = [16, 32], strides = [1, 1]} : vector<16x192xf32> to vector<16x32xf32>
    %28 = arith.truncf %27 : vector<16x32xf32> to vector<16x32xbf16>
    %cst_12 = arith.constant dense<0.000000e+00> : vector<16x16xf32>
    %29 = tpu.matmul %24, %26, %cst_12 {dimension_numbers = #tpu.dot_dimension_numbers<[1], [1], [0], [0], [0, 0, 1, 0], [], []>} : vector<16x32xbf16>, vector<16x32xbf16>, vector<16x16xf32> -> vector<16x16xf32>
    %30 = arith.addf %29, %5 : vector<16x16xf32>
    %cst_13 = arith.constant dense<0xFF800000> : vector<16xf32>
    %31 = vector.multi_reduction <maximumf>, %30, %cst_13 [1] : vector<16x16xf32> to vector<16xf32>
    %32 = vector.shape_cast %31 : vector<16xf32> to vector<16x1xf32>
    %33 = vector.broadcast %32 : vector<16x1xf32> to vector<16x16xf32>
    %34 = arith.subf %30, %33 : vector<16x16xf32>
    %35 = math.exp %34 : vector<16x16xf32>
    %cst_14 = arith.constant dense<0.000000e+00> : vector<16xf32>
    %36 = vector.multi_reduction <add>, %35, %cst_14 [1] : vector<16x16xf32> to vector<16xf32>
    %37 = vector.shape_cast %36 : vector<16xf32> to vector<16x1xf32>
    %38 = arith.truncf %35 : vector<16x16xf32> to vector<16x16xbf16>
    %cst_15 = arith.constant dense<0.000000e+00> : vector<16x32xf32>
    %39 = tpu.matmul %38, %28, %cst_15 {dimension_numbers = #tpu.dot_dimension_numbers<[1], [0], [0], [1], [0, 0, 1, 1], [], []>} : vector<16x16xbf16>, vector<16x32xbf16>, vector<16x32xf32> -> vector<16x32xf32>
    %40 = vector.broadcast %37 : vector<16x1xf32> to vector<16x32xf32>
    %41 = arith.divf %39, %40 : vector<16x32xf32>
    %42 = vector.extract_strided_slice %22 {offsets = [0, 32], sizes = [16, 32], strides = [1, 1]} : vector<16x192xf32> to vector<16x32xf32>
    %43 = arith.truncf %42 : vector<16x32xf32> to vector<16x32xbf16>
    %44 = vector.extract_strided_slice %22 {offsets = [0, 96], sizes = [16, 32], strides = [1, 1]} : vector<16x192xf32> to vector<16x32xf32>
    %45 = arith.truncf %44 : vector<16x32xf32> to vector<16x32xbf16>
    %46 = vector.extract_strided_slice %22 {offsets = [0, 160], sizes = [16, 32], strides = [1, 1]} : vector<16x192xf32> to vector<16x32xf32>
    %47 = arith.truncf %46 : vector<16x32xf32> to vector<16x32xbf16>
    %cst_16 = arith.constant dense<0.000000e+00> : vector<16x16xf32>
    %48 = tpu.matmul %43, %45, %cst_16 {dimension_numbers = #tpu.dot_dimension_numbers<[1], [1], [0], [0], [0, 0, 1, 0], [], []>} : vector<16x32xbf16>, vector<16x32xbf16>, vector<16x16xf32> -> vector<16x16xf32>
    %49 = arith.addf %48, %5 : vector<16x16xf32>
    %cst_17 = arith.constant dense<0xFF800000> : vector<16xf32>
    %50 = vector.multi_reduction <maximumf>, %49, %cst_17 [1] : vector<16x16xf32> to vector<16xf32>
    %51 = vector.shape_cast %50 : vector<16xf32> to vector<16x1xf32>
    %52 = vector.broadcast %51 : vector<16x1xf32> to vector<16x16xf32>
    %53 = arith.subf %49, %52 : vector<16x16xf32>
    %54 = math.exp %53 : vector<16x16xf32>
    %cst_18 = arith.constant dense<0.000000e+00> : vector<16xf32>
    %55 = vector.multi_reduction <add>, %54, %cst_18 [1] : vector<16x16xf32> to vector<16xf32>
    %56 = vector.shape_cast %55 : vector<16xf32> to vector<16x1xf32>
    %57 = arith.truncf %54 : vector<16x16xf32> to vector<16x16xbf16>
    %cst_19 = arith.constant dense<0.000000e+00> : vector<16x32xf32>
    %58 = tpu.matmul %57, %47, %cst_19 {dimension_numbers = #tpu.dot_dimension_numbers<[1], [0], [0], [1], [0, 0, 1, 1], [], []>} : vector<16x16xbf16>, vector<16x32xbf16>, vector<16x32xf32> -> vector<16x32xf32>
    %59 = vector.broadcast %56 : vector<16x1xf32> to vector<16x32xf32>
    %60 = arith.divf %58, %59 : vector<16x32xf32>
    %61 = tpu.concatenate %41, %60 in 1 : vector<16x32xf32>, vector<16x32xf32> -> vector<16x64xf32>
    %62 = arith.truncf %61 : vector<16x64xf32> to vector<16x64xbf16>
    %cst_20 = arith.constant dense<0.000000e+00> : vector<16x64xf32>
    %63 = tpu.matmul %62, %7, %cst_20 {dimension_numbers = #tpu.dot_dimension_numbers<[1], [0], [0], [1], [0, 0, 1, 1], [], []>} : vector<16x64xbf16>, vector<64x64xbf16>, vector<16x64xf32> -> vector<16x64xf32>
    %64 = vector.broadcast %12 : vector<1x64xf32> to vector<16x64xf32>
    %65 = arith.addf %63, %64 : vector<16x64xf32>
    %cst_21 = arith.constant dense<0.000000e+00> : vector<16xf32>
    %66 = vector.multi_reduction <add>, %65, %cst_21 [1] : vector<16x64xf32> to vector<16xf32>
    %67 = vector.shape_cast %66 : vector<16xf32> to vector<16x1xf32>
    %cst_22 = arith.constant 6.400000e+01 : f32
    %68 = vector.broadcast %cst_22 : f32 to vector<16x1xf32>
    %69 = arith.divf %67, %68 : vector<16x1xf32>
    %70 = vector.broadcast %69 : vector<16x1xf32> to vector<16x64xf32>
    %71 = arith.subf %65, %70 : vector<16x64xf32>
    %72 = arith.mulf %71, %71 : vector<16x64xf32>
    %cst_23 = arith.constant dense<0.000000e+00> : vector<16xf32>
    %73 = vector.multi_reduction <add>, %72, %cst_23 [1] : vector<16x64xf32> to vector<16xf32>
    %74 = vector.shape_cast %73 : vector<16xf32> to vector<16x1xf32>
    %cst_24 = arith.constant 6.400000e+01 : f32
    %75 = vector.broadcast %cst_24 : f32 to vector<16x1xf32>
    %76 = arith.divf %74, %75 : vector<16x1xf32>
    %77 = vector.broadcast %69 : vector<16x1xf32> to vector<16x64xf32>
    %78 = arith.subf %65, %77 : vector<16x64xf32>
    %cst_25 = arith.constant 9.99999974E-6 : f32
    %79 = vector.broadcast %cst_25 : f32 to vector<16x1xf32>
    %80 = arith.addf %76, %79 : vector<16x1xf32>
    %81 = math.rsqrt %80 : vector<16x1xf32>
    %82 = vector.broadcast %81 : vector<16x1xf32> to vector<16x64xf32>
    %83 = arith.mulf %78, %82 : vector<16x64xf32>
    %84 = vector.broadcast %13 : vector<1x64xf32> to vector<16x64xf32>
    %85 = arith.mulf %83, %84 : vector<16x64xf32>
    %86 = vector.broadcast %14 : vector<1x64xf32> to vector<16x64xf32>
    %87 = arith.addf %85, %86 : vector<16x64xf32>
    %88 = arith.addf %4, %87 : vector<16x64xf32>
    %89 = arith.truncf %88 : vector<16x64xf32> to vector<16x64xbf16>
    %cst_26 = arith.constant dense<0.000000e+00> : vector<16x128xf32>
    %90 = tpu.matmul %89, %8, %cst_26 {dimension_numbers = #tpu.dot_dimension_numbers<[1], [0], [0], [1], [0, 0, 1, 1], [], []>} : vector<16x64xbf16>, vector<64x128xbf16>, vector<16x128xf32> -> vector<16x128xf32>
    %91 = vector.broadcast %15 : vector<1x128xf32> to vector<16x128xf32>
    %92 = arith.addf %90, %91 : vector<16x128xf32>
    %cst_27 = arith.constant 1.702000e+00 : f32
    %93 = vector.broadcast %cst_27 : f32 to vector<16x128xf32>
    %94 = arith.mulf %93, %92 : vector<16x128xf32>
    %95 = arith.negf %94 : vector<16x128xf32>
    %96 = math.exp %95 : vector<16x128xf32>
    %cst_28 = arith.constant 1.000000e+00 : f32
    %97 = vector.broadcast %cst_28 : f32 to vector<16x128xf32>
    %98 = arith.addf %97, %96 : vector<16x128xf32>
    %99 = arith.divf %97, %98 : vector<16x128xf32>
    %100 = arith.mulf %92, %99 : vector<16x128xf32>
    %101 = arith.truncf %100 : vector<16x128xf32> to vector<16x128xbf16>
    %cst_29 = arith.constant dense<0.000000e+00> : vector<16x64xf32>
    %102 = tpu.matmul %101, %9, %cst_29 {dimension_numbers = #tpu.dot_dimension_numbers<[1], [0], [0], [1], [0, 0, 1, 1], [], []>} : vector<16x128xbf16>, vector<128x64xbf16>, vector<16x64xf32> -> vector<16x64xf32>
    %103 = vector.broadcast %16 : vector<1x64xf32> to vector<16x64xf32>
    %104 = arith.addf %102, %103 : vector<16x64xf32>
    %cst_30 = arith.constant dense<0.000000e+00> : vector<16xf32>
    %105 = vector.multi_reduction <add>, %104, %cst_30 [1] : vector<16x64xf32> to vector<16xf32>
    %106 = vector.shape_cast %105 : vector<16xf32> to vector<16x1xf32>
    %cst_31 = arith.constant 6.400000e+01 : f32
    %107 = vector.broadcast %cst_31 : f32 to vector<16x1xf32>
    %108 = arith.divf %106, %107 : vector<16x1xf32>
    %109 = vector.broadcast %108 : vector<16x1xf32> to vector<16x64xf32>
    %110 = arith.subf %104, %109 : vector<16x64xf32>
    %111 = arith.mulf %110, %110 : vector<16x64xf32>
    %cst_32 = arith.constant dense<0.000000e+00> : vector<16xf32>
    %112 = vector.multi_reduction <add>, %111, %cst_32 [1] : vector<16x64xf32> to vector<16xf32>
    %113 = vector.shape_cast %112 : vector<16xf32> to vector<16x1xf32>
    %cst_33 = arith.constant 6.400000e+01 : f32
    %114 = vector.broadcast %cst_33 : f32 to vector<16x1xf32>
    %115 = arith.divf %113, %114 : vector<16x1xf32>
    %116 = vector.broadcast %108 : vector<16x1xf32> to vector<16x64xf32>
    %117 = arith.subf %104, %116 : vector<16x64xf32>
    %cst_34 = arith.constant 9.99999974E-6 : f32
    %118 = vector.broadcast %cst_34 : f32 to vector<16x1xf32>
    %119 = arith.addf %115, %118 : vector<16x1xf32>
    %120 = math.rsqrt %119 : vector<16x1xf32>
    %121 = vector.broadcast %120 : vector<16x1xf32> to vector<16x64xf32>
    %122 = arith.mulf %117, %121 : vector<16x64xf32>
    %123 = vector.broadcast %17 : vector<1x64xf32> to vector<16x64xf32>
    %124 = arith.mulf %122, %123 : vector<16x64xf32>
    %125 = vector.broadcast %18 : vector<1x64xf32> to vector<16x64xf32>
    %126 = arith.addf %124, %125 : vector<16x64xf32>
    %127 = arith.addf %88, %126 : vector<16x64xf32>
    %c576 = arith.constant 576 : index
    %c0_35 = arith.constant 0 : index
    %128 = vector.load %arg2[%c576, %c0_35] : memref<896x192xbf16, #tpu.memory_space<vmem>>, vector<64x192xbf16>
    %c640 = arith.constant 640 : index
    %c0_36 = arith.constant 0 : index
    %129 = vector.load %arg2[%c640, %c0_36] : memref<896x192xbf16, #tpu.memory_space<vmem>>, vector<64x64xbf16>
    %c704 = arith.constant 704 : index
    %c0_37 = arith.constant 0 : index
    %130 = vector.load %arg2[%c704, %c0_37] : memref<896x192xbf16, #tpu.memory_space<vmem>>, vector<64x128xbf16>
    %c768 = arith.constant 768 : index
    %c0_38 = arith.constant 0 : index
    %131 = vector.load %arg2[%c768, %c0_38] : memref<896x192xbf16, #tpu.memory_space<vmem>>, vector<128x64xbf16>
    %c40 = arith.constant 40 : index
    %c0_39 = arith.constant 0 : index
    %132 = vector.load %arg3[%c40, %c0_39] : memref<48x192xf32, #tpu.memory_space<vmem>>, vector<8x192xf32>
    %133 = vector.extract_strided_slice %132 {offsets = [0, 0], sizes = [1, 192], strides = [1, 1]} : vector<8x192xf32> to vector<1x192xf32>
    %134 = vector.extract_strided_slice %132 {offsets = [1, 0], sizes = [1, 64], strides = [1, 1]} : vector<8x192xf32> to vector<1x64xf32>
    %135 = vector.extract_strided_slice %132 {offsets = [2, 0], sizes = [1, 64], strides = [1, 1]} : vector<8x192xf32> to vector<1x64xf32>
    %136 = vector.extract_strided_slice %132 {offsets = [3, 0], sizes = [1, 64], strides = [1, 1]} : vector<8x192xf32> to vector<1x64xf32>
    %137 = vector.extract_strided_slice %132 {offsets = [4, 0], sizes = [1, 128], strides = [1, 1]} : vector<8x192xf32> to vector<1x128xf32>
    %138 = vector.extract_strided_slice %132 {offsets = [5, 0], sizes = [1, 64], strides = [1, 1]} : vector<8x192xf32> to vector<1x64xf32>
    %139 = vector.extract_strided_slice %132 {offsets = [6, 0], sizes = [1, 64], strides = [1, 1]} : vector<8x192xf32> to vector<1x64xf32>
    %140 = vector.extract_strided_slice %132 {offsets = [7, 0], sizes = [1, 64], strides = [1, 1]} : vector<8x192xf32> to vector<1x64xf32>
    %141 = arith.truncf %127 : vector<16x64xf32> to vector<16x64xbf16>
    %cst_40 = arith.constant dense<0.000000e+00> : vector<16x192xf32>
    %142 = tpu.matmul %141, %128, %cst_40 {dimension_numbers = #tpu.dot_dimension_numbers<[1], [0], [0], [1], [0, 0, 1, 1], [], []>} : vector<16x64xbf16>, vector<64x192xbf16>, vector<16x192xf32> -> vector<16x192xf32>
    %143 = vector.broadcast %133 : vector<1x192xf32> to vector<16x192xf32>
    %144 = arith.addf %142, %143 : vector<16x192xf32>
    %145 = vector.extract_strided_slice %144 {offsets = [0, 0], sizes = [16, 32], strides = [1, 1]} : vector<16x192xf32> to vector<16x32xf32>
    %146 = arith.truncf %145 : vector<16x32xf32> to vector<16x32xbf16>
    %147 = vector.extract_strided_slice %144 {offsets = [0, 64], sizes = [16, 32], strides = [1, 1]} : vector<16x192xf32> to vector<16x32xf32>
    %148 = arith.truncf %147 : vector<16x32xf32> to vector<16x32xbf16>
    %149 = vector.extract_strided_slice %144 {offsets = [0, 128], sizes = [16, 32], strides = [1, 1]} : vector<16x192xf32> to vector<16x32xf32>
    %150 = arith.truncf %149 : vector<16x32xf32> to vector<16x32xbf16>
    %cst_41 = arith.constant dense<0.000000e+00> : vector<16x16xf32>
    %151 = tpu.matmul %146, %148, %cst_41 {dimension_numbers = #tpu.dot_dimension_numbers<[1], [1], [0], [0], [0, 0, 1, 0], [], []>} : vector<16x32xbf16>, vector<16x32xbf16>, vector<16x16xf32> -> vector<16x16xf32>
    %152 = arith.addf %151, %5 : vector<16x16xf32>
    %cst_42 = arith.constant dense<0xFF800000> : vector<16xf32>
    %153 = vector.multi_reduction <maximumf>, %152, %cst_42 [1] : vector<16x16xf32> to vector<16xf32>
    %154 = vector.shape_cast %153 : vector<16xf32> to vector<16x1xf32>
    %155 = vector.broadcast %154 : vector<16x1xf32> to vector<16x16xf32>
    %156 = arith.subf %152, %155 : vector<16x16xf32>
    %157 = math.exp %156 : vector<16x16xf32>
    %cst_43 = arith.constant dense<0.000000e+00> : vector<16xf32>
    %158 = vector.multi_reduction <add>, %157, %cst_43 [1] : vector<16x16xf32> to vector<16xf32>
    %159 = vector.shape_cast %158 : vector<16xf32> to vector<16x1xf32>
    %160 = arith.truncf %157 : vector<16x16xf32> to vector<16x16xbf16>
    %cst_44 = arith.constant dense<0.000000e+00> : vector<16x32xf32>
    %161 = tpu.matmul %160, %150, %cst_44 {dimension_numbers = #tpu.dot_dimension_numbers<[1], [0], [0], [1], [0, 0, 1, 1], [], []>} : vector<16x16xbf16>, vector<16x32xbf16>, vector<16x32xf32> -> vector<16x32xf32>
    %162 = vector.broadcast %159 : vector<16x1xf32> to vector<16x32xf32>
    %163 = arith.divf %161, %162 : vector<16x32xf32>
    %164 = vector.extract_strided_slice %144 {offsets = [0, 32], sizes = [16, 32], strides = [1, 1]} : vector<16x192xf32> to vector<16x32xf32>
    %165 = arith.truncf %164 : vector<16x32xf32> to vector<16x32xbf16>
    %166 = vector.extract_strided_slice %144 {offsets = [0, 96], sizes = [16, 32], strides = [1, 1]} : vector<16x192xf32> to vector<16x32xf32>
    %167 = arith.truncf %166 : vector<16x32xf32> to vector<16x32xbf16>
    %168 = vector.extract_strided_slice %144 {offsets = [0, 160], sizes = [16, 32], strides = [1, 1]} : vector<16x192xf32> to vector<16x32xf32>
    %169 = arith.truncf %168 : vector<16x32xf32> to vector<16x32xbf16>
    %cst_45 = arith.constant dense<0.000000e+00> : vector<16x16xf32>
    %170 = tpu.matmul %165, %167, %cst_45 {dimension_numbers = #tpu.dot_dimension_numbers<[1], [1], [0], [0], [0, 0, 1, 0], [], []>} : vector<16x32xbf16>, vector<16x32xbf16>, vector<16x16xf32> -> vector<16x16xf32>
    %171 = arith.addf %170, %5 : vector<16x16xf32>
    %cst_46 = arith.constant dense<0xFF800000> : vector<16xf32>
    %172 = vector.multi_reduction <maximumf>, %171, %cst_46 [1] : vector<16x16xf32> to vector<16xf32>
    %173 = vector.shape_cast %172 : vector<16xf32> to vector<16x1xf32>
    %174 = vector.broadcast %173 : vector<16x1xf32> to vector<16x16xf32>
    %175 = arith.subf %171, %174 : vector<16x16xf32>
    %176 = math.exp %175 : vector<16x16xf32>
    %cst_47 = arith.constant dense<0.000000e+00> : vector<16xf32>
    %177 = vector.multi_reduction <add>, %176, %cst_47 [1] : vector<16x16xf32> to vector<16xf32>
    %178 = vector.shape_cast %177 : vector<16xf32> to vector<16x1xf32>
    %179 = arith.truncf %176 : vector<16x16xf32> to vector<16x16xbf16>
    %cst_48 = arith.constant dense<0.000000e+00> : vector<16x32xf32>
    %180 = tpu.matmul %179, %169, %cst_48 {dimension_numbers = #tpu.dot_dimension_numbers<[1], [0], [0], [1], [0, 0, 1, 1], [], []>} : vector<16x16xbf16>, vector<16x32xbf16>, vector<16x32xf32> -> vector<16x32xf32>
    %181 = vector.broadcast %178 : vector<16x1xf32> to vector<16x32xf32>
    %182 = arith.divf %180, %181 : vector<16x32xf32>
    %183 = tpu.concatenate %163, %182 in 1 : vector<16x32xf32>, vector<16x32xf32> -> vector<16x64xf32>
    %184 = arith.truncf %183 : vector<16x64xf32> to vector<16x64xbf16>
    %cst_49 = arith.constant dense<0.000000e+00> : vector<16x64xf32>
    %185 = tpu.matmul %184, %129, %cst_49 {dimension_numbers = #tpu.dot_dimension_numbers<[1], [0], [0], [1], [0, 0, 1, 1], [], []>} : vector<16x64xbf16>, vector<64x64xbf16>, vector<16x64xf32> -> vector<16x64xf32>
    %186 = vector.broadcast %134 : vector<1x64xf32> to vector<16x64xf32>
    %187 = arith.addf %185, %186 : vector<16x64xf32>
    %cst_50 = arith.constant dense<0.000000e+00> : vector<16xf32>
    %188 = vector.multi_reduction <add>, %187, %cst_50 [1] : vector<16x64xf32> to vector<16xf32>
    %189 = vector.shape_cast %188 : vector<16xf32> to vector<16x1xf32>
    %cst_51 = arith.constant 6.400000e+01 : f32
    %190 = vector.broadcast %cst_51 : f32 to vector<16x1xf32>
    %191 = arith.divf %189, %190 : vector<16x1xf32>
    %192 = vector.broadcast %191 : vector<16x1xf32> to vector<16x64xf32>
    %193 = arith.subf %187, %192 : vector<16x64xf32>
    %194 = arith.mulf %193, %193 : vector<16x64xf32>
    %cst_52 = arith.constant dense<0.000000e+00> : vector<16xf32>
    %195 = vector.multi_reduction <add>, %194, %cst_52 [1] : vector<16x64xf32> to vector<16xf32>
    %196 = vector.shape_cast %195 : vector<16xf32> to vector<16x1xf32>
    %cst_53 = arith.constant 6.400000e+01 : f32
    %197 = vector.broadcast %cst_53 : f32 to vector<16x1xf32>
    %198 = arith.divf %196, %197 : vector<16x1xf32>
    %199 = vector.broadcast %191 : vector<16x1xf32> to vector<16x64xf32>
    %200 = arith.subf %187, %199 : vector<16x64xf32>
    %cst_54 = arith.constant 9.99999974E-6 : f32
    %201 = vector.broadcast %cst_54 : f32 to vector<16x1xf32>
    %202 = arith.addf %198, %201 : vector<16x1xf32>
    %203 = math.rsqrt %202 : vector<16x1xf32>
    %204 = vector.broadcast %203 : vector<16x1xf32> to vector<16x64xf32>
    %205 = arith.mulf %200, %204 : vector<16x64xf32>
    %206 = vector.broadcast %135 : vector<1x64xf32> to vector<16x64xf32>
    %207 = arith.mulf %205, %206 : vector<16x64xf32>
    %208 = vector.broadcast %136 : vector<1x64xf32> to vector<16x64xf32>
    %209 = arith.addf %207, %208 : vector<16x64xf32>
    %210 = arith.addf %127, %209 : vector<16x64xf32>
    %211 = arith.truncf %210 : vector<16x64xf32> to vector<16x64xbf16>
    %cst_55 = arith.constant dense<0.000000e+00> : vector<16x128xf32>
    %212 = tpu.matmul %211, %130, %cst_55 {dimension_numbers = #tpu.dot_dimension_numbers<[1], [0], [0], [1], [0, 0, 1, 1], [], []>} : vector<16x64xbf16>, vector<64x128xbf16>, vector<16x128xf32> -> vector<16x128xf32>
    %213 = vector.broadcast %137 : vector<1x128xf32> to vector<16x128xf32>
    %214 = arith.addf %212, %213 : vector<16x128xf32>
    %cst_56 = arith.constant 1.702000e+00 : f32
    %215 = vector.broadcast %cst_56 : f32 to vector<16x128xf32>
    %216 = arith.mulf %215, %214 : vector<16x128xf32>
    %217 = arith.negf %216 : vector<16x128xf32>
    %218 = math.exp %217 : vector<16x128xf32>
    %cst_57 = arith.constant 1.000000e+00 : f32
    %219 = vector.broadcast %cst_57 : f32 to vector<16x128xf32>
    %220 = arith.addf %219, %218 : vector<16x128xf32>
    %221 = arith.divf %219, %220 : vector<16x128xf32>
    %222 = arith.mulf %214, %221 : vector<16x128xf32>
    %223 = arith.truncf %222 : vector<16x128xf32> to vector<16x128xbf16>
    %cst_58 = arith.constant dense<0.000000e+00> : vector<16x64xf32>
    %224 = tpu.matmul %223, %131, %cst_58 {dimension_numbers = #tpu.dot_dimension_numbers<[1], [0], [0], [1], [0, 0, 1, 1], [], []>} : vector<16x128xbf16>, vector<128x64xbf16>, vector<16x64xf32> -> vector<16x64xf32>
    %225 = vector.broadcast %138 : vector<1x64xf32> to vector<16x64xf32>
    %226 = arith.addf %224, %225 : vector<16x64xf32>
    %cst_59 = arith.constant dense<0.000000e+00> : vector<16xf32>
    %227 = vector.multi_reduction <add>, %226, %cst_59 [1] : vector<16x64xf32> to vector<16xf32>
    %228 = vector.shape_cast %227 : vector<16xf32> to vector<16x1xf32>
    %cst_60 = arith.constant 6.400000e+01 : f32
    %229 = vector.broadcast %cst_60 : f32 to vector<16x1xf32>
    %230 = arith.divf %228, %229 : vector<16x1xf32>
    %231 = vector.broadcast %230 : vector<16x1xf32> to vector<16x64xf32>
    %232 = arith.subf %226, %231 : vector<16x64xf32>
    %233 = arith.mulf %232, %232 : vector<16x64xf32>
    %cst_61 = arith.constant dense<0.000000e+00> : vector<16xf32>
    %234 = vector.multi_reduction <add>, %233, %cst_61 [1] : vector<16x64xf32> to vector<16xf32>
    %235 = vector.shape_cast %234 : vector<16xf32> to vector<16x1xf32>
    %cst_62 = arith.constant 6.400000e+01 : f32
    %236 = vector.broadcast %cst_62 : f32 to vector<16x1xf32>
    %237 = arith.divf %235, %236 : vector<16x1xf32>
    %238 = vector.broadcast %230 : vector<16x1xf32> to vector<16x64xf32>
    %239 = arith.subf %226, %238 : vector<16x64xf32>
    %cst_63 = arith.constant 9.99999974E-6 : f32
    %240 = vector.broadcast %cst_63 : f32 to vector<16x1xf32>
    %241 = arith.addf %237, %240 : vector<16x1xf32>
    %242 = math.rsqrt %241 : vector<16x1xf32>
    %243 = vector.broadcast %242 : vector<16x1xf32> to vector<16x64xf32>
    %244 = arith.mulf %239, %243 : vector<16x64xf32>
    %245 = vector.broadcast %139 : vector<1x64xf32> to vector<16x64xf32>
    %246 = arith.mulf %244, %245 : vector<16x64xf32>
    %247 = vector.broadcast %140 : vector<1x64xf32> to vector<16x64xf32>
    %248 = arith.addf %246, %247 : vector<16x64xf32>
    %249 = arith.addf %210, %248 : vector<16x64xf32>
    %c0_64 = arith.constant 0 : index
    %c0_65 = arith.constant 0 : index
    %250 = vector.load %arg4[%c0_64, %c0_65] : memref<16x64xf32, #tpu.memory_space<vmem>>, vector<16x64xf32>
    tpu.vector_store %arg4[%c0_64, %c0_65], %249 {strides = array<i32>} : memref<16x64xf32, #tpu.memory_space<vmem>>, vector<16x64xf32>,
    return
  }
  func.func @transform_0(%arg0: i32) -> (i32, i32) {
    %c0_i32 = arith.constant 0 : i32
    %c0_i32_0 = arith.constant 0 : i32
    %c0_i32_1 = arith.constant 0 : i32
    return %c0_i32, %c0_i32_0 : i32, i32
  }
  func.func @transform_1(%arg0: i32) -> (i32, i32) {
    %c0_i32 = arith.constant 0 : i32
    %c0_i32_0 = arith.constant 0 : i32
    %c0_i32_1 = arith.constant 0 : i32
    return %c0_i32, %c0_i32_0 : i32, i32
  }
  func.func @transform_2(%arg0: i32) -> (i32, i32) {
    %c0_i32 = arith.constant 0 : i32
    %c0_i32_0 = arith.constant 0 : i32
    %c0_i32_1 = arith.constant 0 : i32
    return %c0_i32, %c0_i32_0 : i32, i32
  }
  func.func @transform_3(%arg0: i32) -> (i32, i32) {
    %c0_i32 = arith.constant 0 : i32
    %c0_i32_0 = arith.constant 0 : i32
    %c0_i32_1 = arith.constant 0 : i32
    return %c0_i32, %c0_i32_0 : i32, i32
  }
}

</mosaic_0001>

<bundles_post_ra>
// kernel: step3_vision_transformer_forward.1
= control target key start
LH: loop header
LB: loop body
LE: loop exit
PB: predicated region body
PF: predicated region fallthrough
CT: control target
= control target key end

     0   :  { %s2656_s0 = inlined_call_operand.vmem [shape: bf16[16,256], index: 0, kind: input, shape index: {}]   ;;  %s2657_s1 = inlined_call_operand.vmem [shape: bf16[896,192], index: 1, kind: input, shape index: {}]   ;;  %s2658_s2 = inlined_call_operand.vmem [shape: f32[48,192], index: 2, kind: input, shape index: {}]   ;;  %s2659_s3 = inlined_call_operand.hbm [shape: f32[16,64], index: 3, kind: output, shape index: {}]  }
   0x1   :  { %v1986_v0 = vld [vmem:[%s2657_s1 + $0x80] ss:$8 sps:$4 sm:$0xff]   ;;  %v1988_v2 = vld [vmem:[%s2657_s1 + $0x90] ss:$8 sps:$4 sm:$0xff]   ;;  %v2004_v12 = vld [vmem:[%s2656_s0 + $0x4] ss:$8 sps:$4 sm:$0xff]  }
   0x2   :  { %v1987_v1 = vld [vmem:[%s2657_s1] ss:$8 sps:$4 sm:$0xff]   ;;  %1755 = vmatprep.subr.bf16.mxu0 %v1986_v0  ;;  %v1989_v3 = vld [vmem:[%s2657_s1 + $0x10] ss:$8 sps:$4 sm:$0xff]   ;;  %v2005_v14 = vld [vmem:[%s2657_s1 + $0x104] ss:$8 sps:$4 sm:$0xff]   ;;  %190 = vmatprep.mubr.bf16.mxu0 %v2004_v12 }
   0x3   :  { %1756 = vmatpush3.bf16.msra.mxu0 %v1987_v1  ;;  %v1990_v4 = vld [vmem:[%s2657_s1 + $0xa0] ss:$8 sps:$4 sm:$0xff]   ;;  %v1992_v6 = vld [vmem:[%s2657_s1 + $0xb0] ss:$8 sps:$4 sm:$0xff]   ;;  %v2008_v16 = vld [vmem:[%s2657_s1 + $0x114] ss:$8 sps:$4 sm:$0xff]   ;;  %296 = vmatprep.subr.bf16.mxu1 %v2005_v14 }
   0x4   :  { %1757 = vmatprep.subr.bf16.mxu0 %v1988_v2  ;;  %v1991_v5 = vld [vmem:[%s2657_s1 + $0x20] ss:$8 sps:$4 sm:$0xff]   ;;  %v1993_v7 = vld [vmem:[%s2657_s1 + $0x30] ss:$8 sps:$4 sm:$0xff]  }
   0x5   :  { %v1994_v8 = vld [vmem:[%s2657_s1 + $0xc0] ss:$8 sps:$4 sm:$0xff]   ;;  %v1996_v10 = vld [vmem:[%s2657_s1 + $0xd0] ss:$8 sps:$4 sm:$0xff]  }
   0x6   :  { %v1995_v9 = vld [vmem:[%s2657_s1 + $0x40] ss:$8 sps:$4 sm:$0xff]   ;;  %v1997_v11 = vld [vmem:[%s2657_s1 + $0x50] ss:$8 sps:$4 sm:$0xff]  }
   0x7   :  { %1758 = vmatpush3.bf16.msra.mxu0 %v1989_v3  ;;  %v1998_v13 = vld [vmem:[%s2657_s1 + $0xe0] ss:$8 sps:$4 sm:$0xff]   ;;  %v2010_v17 = vld [vmem:[%s2657_s1 + $0x110] ss:$8 sps:$4 sm:$0xff]  }
   0x8   :  { %1759 = vmatprep.subr.bf16.mxu0 %v1990_v4  ;;  %v2007_v15 = vld [vmem:[%s2657_s1 + $0x100] ss:$8 sps:$4 sm:$0xff]   ;;  %v2000_v19 = vld [vmem:[%s2657_s1 + $0xf0] ss:$8 sps:$4 sm:$0xff]  }
   0x9   :  { %v1999_v18 = vld [vmem:[%s2657_s1 + $0x60] ss:$8 sps:$4 sm:$0xff]   ;;  %297 = vmatpush1.bf16.msra.mxu1 %v2007_v15  ;;  %v2001_v20 = vld [vmem:[%s2657_s1 + $0x70] ss:$8 sps:$4 sm:$0xff]  }
   0xa   :  { %298 = vmatprep.subr.bf16.mxu1 %v2008_v16  ;;  %v2002_v21 = vld [vmem:[%s2656_s0] ss:$8 sps:$4 sm:$0xff]  }
   0xb   :  { %1760 = vmatpush3.bf16.msra.mxu0 %v1991_v5 }
   0xc   :  { %1761 = vmatprep.subr.bf16.mxu0 %v1992_v6 }
   0xd   :  { %299 = vmatpush1.bf16.msra.mxu1 %v2010_v17 }
   0xf   :  { %1762 = vmatpush3.bf16.msra.mxu0 %v1993_v7 }
  0x10   :  { %1763 = vmatprep.subr.bf16.mxu0 %v1994_v8 }
  0x13   :  { %1764 = vmatpush3.bf16.msra.mxu0 %v1995_v9 }
  0x14   :  { %1765 = vmatprep.subr.bf16.mxu0 %v1996_v10 }
  0x17   :  { %1766 = vmatpush3.bf16.msra.mxu0 %v1997_v11 }
  0x18   :  { %1767 = vmatprep.subr.bf16.mxu0 %v1998_v13 }
  0x1b   :  { %1768 = vmatpush3.bf16.msra.mxu0 %v1999_v18 }
  0x1c   :  { %1769 = vmatprep.subr.bf16.mxu0 %v2000_v19 }
  0x1f   :  { %1770 = vmatpush3.bf16.msra.mxu0 %v2001_v20 }
  0x22   :  { %191 = vmatmul.mubr.bf16.vlgmr.msra.gmra.mrb[0].mxu0 %v2002_v21 }
  0x23   :  { %8 = vsyncpa [#allocation3], 0  ;;  %v2011_v22 = vld [vmem:[%s2657_s1 + $0x124] ss:$8 sps:$4 sm:$0xff]   ;;  %v2013_v23 = vld [vmem:[%s2657_s1 + $0x120] ss:$8 sps:$4 sm:$0xff]   ;;  %v244_v38 = vlaneseq }
  0x24   :  { %300 = vmatprep.subr.bf16.mxu1 %v2011_v22  ;;  %v2014_v24 = vld [vmem:[%s2657_s1 + $0x134] ss:$8 sps:$4 sm:$0xff]   ;;  %v2016_v25 = vld [vmem:[%s2657_s1 + $0x130] ss:$8 sps:$4 sm:$0xff]   ;;  %v2149_v26 = vmov 0   ;;  %v50_v31 = vld [vmem:[%s2658_s2] sm:$0xff] }
  0x25   :  { %301 = vmatpush1.bf16.msra.mxu1 %v2013_v23  ;;  %328 = vmatprep.mubr.bf16.mxu1 %v2149_v26  ;;  %v51_v32 = vld [vmem:[%s2658_s2 + $0x10] sm:$0xff]  ;;  %vm292_vm0 = vcmask 523264   ;;  %v2270_v39 = vshrl.u32 %v244_v38, 7  ;;  %v2150_v40 = vmov 0.0   ;;  %v2280_v42 = vld [vmem:[%s2658_s2 + $0x40] sm:$0xff]  ;;  %v242_v43 = vld [vmem:[%s2658_s2 + $0x48] sm:$0xff] }
  0x26   :  { %302 = vmatprep.subr.bf16.mxu1 %v2014_v24  ;;  %1843 = vmatprep.subr.bf16.mxu0 %v2150_v40  ;;  %vm2151_vm1 = vmmov 0   ;;  %s2152_s17 = smov 96   ;;  %s2153_s18 = smov 64   ;;  %vm344_vm2 = vcmask 261120   ;;  %v2309_v61 = vld [vmem:[%s2658_s2 + $0x20] sm:$0xff]  ;;  %v2314_v63 = vld [vmem:[%s2658_s2 + $0x30] sm:$0xff] }
  0x27   :  { %v2275_v41 = vsub.s32 0, %v2270_v39  ;;  %1845 = vmatprep.mubr.msk.bf16.mxu0 %vm2151_vm1, %v2150_v40  ;;  %s2154_s19 = smov 32   ;;  %vm392_vm3 = vcmask 130048  }
  0x29   :  { %303 = vmatpush1.bf16.msra.mxu1 %v2016_v25  ;;  %v247_v44 = vrot.slane %v2280_v42, %v2275_v41  ;;  %v251_v46 = vrot.slane %v242_v43, %v2275_v41 }
  0x2a   :  { %1831 = vmatprep.subr.bf16.mxu1 %v2150_v40 }
  0xf5   :  { %v1771_v27 = vpop.f32.mrb[0].mxu0 }
  0xf6   :  { %v1772_v28 = vpop.f32.mrb[1].mxu0 }
  0xf7   :  { %v1773_v29 = vadd.f32 %v1772_v28, %v1771_v27  ;;  %v1774_v30 = vpop.f32.mrb[2].mxu0 }
  0xf8   :  { %v1775_v33 = vpop.f32.mrb[3].mxu0 }
  0xf9   :  { %v1776_v34 = vadd.f32 %v1775_v33, %v1774_v30  ;;  %v2263_v35 = vadd.f32 %v1773_v29, %v50_v31 }
  0xfb   :  { %v2265_v36 = vadd.f32 %v1776_v34, %v51_v32 }
  0xfd   :  { %v243_v37 = vpack.c.bf16 %v2265_v36, %v2263_v35 }
  0xff   :  { %1697 = vmatmul.mubr.msk.bf16.vlgmr.msra.gmra.mrb[0].mxu1 %vm292_vm0, %v243_v37 }
 0x100   :  { %1833 = vmatprep.mubr.msk.bf16.mxu1 %vm2151_vm1, %v2150_v40 }
 0x1d2   :  { %v330_v45 = vpop.f32.mrb[0].mxu1 }
 0x1d3   :  { %v332_v47 = vpop.f32.mrb[1].mxu1  ;;  %v331_v49 = vadd.f32 %v330_v45, %v247_v44  ;;  %v2017_v45 = vld [vmem:[%s2657_s1 + $0x140] ss:$8 sps:$4 sm:$0xff]  }
 0x1d4   :  { %v334_v48 = vpop.f32.mrb[2].mxu1  ;;  %v333_v52 = vadd.f32 %v332_v47, %v251_v46  ;;  %v2019_v47 = vld [vmem:[%s2657_s1 + $0x160] ss:$8 sps:$4 sm:$0xff]  }
 0x1d5   :  { %v335_v50 = vadd.f32 %v334_v48, %v247_v44  ;;  %v336_v51 = vpop.f32.mrb[3].mxu1 }
 0x1d6   :  { %v337_v53 = vadd.f32 %v336_v51, %v251_v46  ;;  %v2018_v46 = vld [vmem:[%s2657_s1 + $0x150] ss:$8 sps:$4 sm:$0xff]  }
 0x1d7   :  { %v339_v54 = vpack.c.bf16 %v335_v50, %v331_v49 }
 0x1d8   :  { %v340_v55 = vpack.c.bf16 %v337_v53, %v333_v52 }
 0x1d9   :  { %460 = vrot.lane.b32.xlu1 %v339_v54, %s2152_s17  ;;  %342 = vrot.lane.b32.xlu0 %v339_v54, %s2153_s18 }
 0x1dd   :  { %462 = vrot.lane.b32.xlu0 %v339_v54, %s2154_s19 }
 0x24b   :  { %v343_v56 = vpop.permute.xlu0 %342  ;;  %v461_v60 = vpop.permute.xlu1 %460 }
 0x24c   :  { %v349_v57 = vsel %vm344_vm2, %v343_v56, 0 }
 0x24d   :  { %1832 = vmatpush3.bf16.xpose.msra.mxu1 %v349_v57 }
 0x24e   :  { %1837 = vmatprep.subr.bf16.mxu1 %v2150_v40 }
 0x24f   :  { %v463_v58 = vpop.permute.xlu0 %462 }
 0x250   :  { %v468_v59 = vsel %vm344_vm2, %v463_v58, 0 }
 0x251   :  { %1844 = vmatpush3.bf16.xpose.msra.mxu0 %v468_v59 }
 0x252   :  { %1879 = vmatprep.subr.bf16.mxu0 %v2150_v40 }
 0x254   :  { %1834 = vmatmul.mubr.msk.bf16.vlgmr.msra.gmra.mrb[4].mxu1 %vm344_vm2, %v339_v54  ;;  %v2020_v54 = vld [vmem:[%s2657_s1 + $0x170] ss:$8 sps:$4 sm:$0xff]  }
 0x255   :  { %1838 = vmatpush3.bf16.msra.mxu1 %v340_v55  ;;  %1839 = vmatprep.mubr.msk.bf16.mxu1 %vm2151_vm1, %v2150_v40 }
 0x256   :  { %1849 = vmatprep.subr.bf16.mxu1 %v2150_v40 }
 0x258   :  { %1846 = vmatmul.mubr.msk.bf16.vlgmr.msra.gmra.mrb[4].mxu0 %vm344_vm2, %v461_v60 }
 0x259   :  { %1895 = vmatprep.mubr.msk.bf16.mxu0 %vm2151_vm1, %v2150_v40 }
 0x327   :  { %v385_v62 = vpop.f32.mrb[4].mxu1 }
 0x328   :  { %v386_v0 = vadd.f32 %v385_v62, %v2309_v61  ;;  %v1835_v1 = vpop.f32.mrb[5].mxu1 }
 0x329   :  { %v388_v2 = vpop.f32.mrb[6].mxu1 }
 0x32a   :  { %v389_v3 = vadd.f32 %v388_v2, %v2314_v63  ;;  %v1836_v4 = vpop.f32.mrb[7].mxu1  ;;  %v393_v5 = vsel %vm392_vm3, %v386_v0, -inf }
 0x32b   :  { %394 = vmax.xlane.f32.xlu1 %v393_v5  ;;  %v504_v6 = vpop.f32.mrb[4].mxu0 }
 0x32c   :  { %v505_v7 = vadd.f32 %v504_v6, %v2309_v61  ;;  %v1847_v8 = vpop.f32.mrb[5].mxu0  ;;  %v396_v9 = vsel %vm392_vm3, %v389_v3, -inf }
 0x32d   :  { %397 = vmax.xlane.f32.xlu0 %v396_v9  ;;  %v507_v10 = vpop.f32.mrb[6].mxu0 }
 0x32e   :  { %v508_v11 = vadd.f32 %v507_v10, %v2314_v63  ;;  %v1848_v12 = vpop.f32.mrb[7].mxu0  ;;  %v511_v13 = vsel %vm392_vm3, %v505_v7, -inf }
 0x330   :  { %v514_v14 = vsel %vm392_vm3, %v508_v11, -inf }
 0x331   :  { %512 = vmax.xlane.f32.xlu0 %v511_v13  ;;  %515 = vmax.xlane.f32.xlu1 %v514_v14  ;;  %v595_v14 = vsub.s32 1, %v2270_v39 }
 0x347   :  { %531 = vrot.lane.b32.xlu0 %v340_v55, %s2152_s17 }
 0x3b8   :  { %v395_v15 = vpop.xlane.xlu1 %394 }
 0x3b9   :  { %v399_v16 = vsub.f32 %v386_v0, %v395_v15  ;;  %v596_v15 = vrot.slane %v2280_v42, %v595_v14 }
 0x3ba   :  { %v398_v17 = vpop.xlane.xlu0 %397 }
 0x3bb   :  { %v401_v18 = vmul.f32 1.442695, %v399_v16  ;;  %v400_v19 = vsub.f32 %v389_v3, %v398_v17 }
 0x3bd   :  { %v403_v20 = vmul.f32 1.442695, %v400_v19  ;;  %2061 = vpow2.f32 %v401_v18 }
 0x3be   :  { %v516_v21 = vpop.xlane.xlu1 %515  ;;  %v513_v22 = vpop.xlane.xlu0 %512 }
 0x3bf   :  { %2063 = vpow2.f32 %v403_v20  ;;  %v518_v23 = vsub.f32 %v508_v11, %v516_v21  ;;  %v517_v24 = vsub.f32 %v505_v7, %v513_v22 }
 0x3c1   :  { %v521_v25 = vmul.f32 1.442695, %v518_v23  ;;  %v519_v27 = vmul.f32 1.442695, %v517_v24 }
 0x3c2   :  { %v532_v31 = vpop.permute.xlu0 %531 }
 0x3c3   :  { %2065 = vpow2.f32 %v519_v27 }
 0x3c4   :  { %2067 = vpow2.f32 %v521_v25 }
 0x3c7   :  { %v2062_v28 = vpop.eup %2061 }
 0x3c8   :  { %v405_v43 = vsel %vm392_vm3, %v2062_v28, 0.0 }
 0x3c9   :  { %v2064_v29 = vpop.eup %2063 }
 0x3ca   :  { %v411_v30 = vpack.c.bf16 %v2064_v29, %v2062_v28  ;;  %v408_v44 = vsel %vm392_vm3, %v2064_v29, 0.0 }
 0x3cc   :  { %1840 = vmatmul.mubr.msk.bf16.vlgmr.msra.gmra.mrb[8].mxu1 %vm392_vm3, %v411_v30 }
 0x3cd   :  { %1850 = vmatpush3.bf16.msra.mxu1 %v532_v31  ;;  %1851 = vmatprep.mubr.msk.bf16.mxu1 %vm2151_vm1, %v2150_v40  ;;  %v2066_v32 = vpop.eup %2065 }
 0x3ce   :  { %1855 = vmatprep.subr.bf16.mxu1 %v2150_v40  ;;  %v2068_v33 = vpop.eup %2067  ;;  %v523_v34 = vsel %vm392_vm3, %v2066_v32, 0.0 }
 0x3cf   :  { %524 = vadd.xlane.f32.xlu1 %v523_v34  ;;  %v529_v37 = vpack.c.bf16 %v2068_v33, %v2066_v32  ;;  %v526_v38 = vsel %vm392_vm3, %v2068_v33, 0.0 }
 0x3d3   :  { %527 = vadd.xlane.f32.xlu1 %v526_v38  ;;  %v2022_v38 = vld [vmem:[%s2657_s1 + $0x190] ss:$8 sps:$4 sm:$0xff]  }
 0x3d4   :  { %1852 = vmatmul.mubr.msk.bf16.vlgmr.msra.gmra.mrb[12].mxu1 %vm392_vm3, %v529_v37  ;;  %v2021_v37 = vld [vmem:[%s2657_s1 + $0x180] ss:$8 sps:$4 sm:$0xff]  }
 0x3d5   :  { %1863 = vmatprep.mubr.msk.bf16.mxu1 %vm2151_vm1, %v2150_v40  ;;  %1856 = vmatpush3.bf16.msra.mxu1 %v2017_v45 }
 0x3d6   :  { %1857 = vmatprep.subr.bf16.mxu1 %v2150_v40 }
 0x3d7   :  { %406 = vadd.xlane.f32.xlu1 %v405_v43  ;;  %v2023_v43 = vld [vmem:[%s2657_s1 + $0x1a0] ss:$8 sps:$4 sm:$0xff]  }
 0x3d9   :  { %1858 = vmatpush3.bf16.msra.mxu1 %v2018_v46 }
 0x3da   :  { %1859 = vmatprep.subr.bf16.mxu1 %v2150_v40 }
 0x3db   :  { %409 = vadd.xlane.f32.xlu1 %v408_v44  ;;  %v2024_v44 = vld [vmem:[%s2657_s1 + $0x1b0] ss:$8 sps:$4 sm:$0xff]  }
 0x3dd   :  { %1860 = vmatpush3.bf16.msra.mxu1 %v2019_v47 }
 0x3de   :  { %1861 = vmatprep.subr.bf16.mxu1 %v2150_v40 }
 0x3e1   :  { %1862 = vmatpush3.bf16.msra.mxu1 %v2020_v54 }
 0x3e2   :  { %1867 = vmatprep.subr.bf16.mxu1 %v2150_v40 }
 0x45c   :  { %v525_v48 = vpop.xlane.xlu1 %524 }
 0x45d   :  { %2069 = vrcp.f32 %v525_v48 }
 0x460   :  { %v528_v49 = vpop.xlane.xlu1 %527 }
 0x461   :  { %2071 = vrcp.f32 %v528_v49 }
 0x464   :  { %v407_v2 = vpop.xlane.xlu1 %406 }
 0x465   :  { %2073 = vrcp.f32 %v407_v2 }
 0x467   :  { %v2070_v56 = vpop.eup %2069 }
 0x468   :  { %v410_v3 = vpop.xlane.xlu1 %409 }
 0x469   :  { %2075 = vrcp.f32 %v410_v3 }
 0x46b   :  { %v2072_v58 = vpop.eup %2071 }
 0x46f   :  { %v2074_v4 = vpop.eup %2073 }
 0x473   :  { %v2076_v5 = vpop.eup %2075 }
 0x49f   :  { %v449_v50 = vpop.f32.mrb[8].mxu1 }
 0x4a0   :  { %v1841_v51 = vpop.f32.mrb[9].mxu1  ;;  %v457_v7 = vmul.f32 %v2074_v4, %v449_v50  ;;  %v2025_v4 = vld [vmem:[%s2657_s1 + $0x1c0] ss:$8 sps:$4 sm:$0xff]  }
 0x4a1   :  { %v452_v52 = vpop.f32.mrb[10].mxu1  ;;  %v694_v51 = vsub.s32 2, %v2270_v39  ;;  %1880 = vmatpush3.bf16.msra.mxu0 %v2025_v4  ;;  %v2041_v4 = vld [vmem:[%s2657_s1 + $0x264] ss:$8 sps:$4 sm:$0xff]  }
 0x4a2   :  { %v1842_v53 = vpop.f32.mrb[11].mxu1  ;;  %v459_v8 = vmul.f32 %v2076_v5, %v452_v52  ;;  %1881 = vmatprep.subr.bf16.mxu0 %v2150_v40  ;;  %v2029_v5 = vld [vmem:[%s2657_s1 + $0x200] ss:$8 sps:$4 sm:$0xff]  }
 0x4a3   :  { %v695_v52 = vrot.slane %v2280_v42, %v694_v51  ;;  %v700_v53 = vsub.s32 3, %v2270_v39 }
 0x4a7   :  { %v571_v55 = vpop.f32.mrb[12].mxu1 }
 0x4a8   :  { %v1853_v57 = vpop.f32.mrb[13].mxu1  ;;  %v579_v60 = vmul.f32 %v2070_v56, %v571_v55 }
 0x4a9   :  { %v574_v59 = vpop.f32.mrb[14].mxu1  ;;  %v701_v57 = vrot.slane %v2280_v42, %v700_v53 }
 0x4aa   :  { %v581_v62 = vmul.f32 %v2072_v58, %v574_v59  ;;  %v1854_v0 = vpop.f32.mrb[15].mxu1 }
 0x4ac   :  { %v1976_v1 = vpack.i.bf16 %v581_v62, %v579_v60 }
 0x4ae   :  { %1977 = vrot.lane.b32.xlu1 %v1976_v1, %s2154_s19 }
 0x520   :  { %v1978_v6 = vpop.permute.xlu1 %1977 }
 0x521   :  { %v1980_v9 = vunpack.i.h.bf16 %v1978_v6  ;;  %v1979_v10 = vunpack.i.l.bf16 %v1978_v6  ;;  %v2030_v6 = vld [vmem:[%s2657_s1 + $0x210] ss:$8 sps:$4 sm:$0xff]  }
 0x523   :  { %v591_v11 = vsel %vm344_vm2, %v459_v8, %v1980_v9  ;;  %v590_v12 = vsel %vm344_vm2, %v457_v7, %v1979_v10  ;;  %v2031_v7 = vld [vmem:[%s2657_s1 + $0x220] ss:$8 sps:$4 sm:$0xff]   ;;  %v2032_v8 = vld [vmem:[%s2657_s1 + $0x230] ss:$8 sps:$4 sm:$0xff]   ;;  %v709_v9 = vsub.s32 4, %v2270_v39 }
 0x524   :  { %v592_v13 = vpack.c.bf16 %v591_v11, %v590_v12 }
 0x525   :  { %v710_v10 = vrot.slane %v2280_v42, %v709_v9 }
 0x526   :  { %1864 = vmatmul.mubr.msk.bf16.vlgmr.msra.gmra.mrb[16].mxu1 %vm292_vm0, %v592_v13 }
 0x527   :  { %1875 = vmatprep.mubr.msk.bf16.mxu1 %vm2151_vm1, %v2150_v40  ;;  %1868 = vmatpush3.bf16.msra.mxu1 %v2021_v37 }
 0x528   :  { %1869 = vmatprep.subr.bf16.mxu1 %v2150_v40 }
 0x52b   :  { %1870 = vmatpush3.bf16.msra.mxu1 %v2022_v38 }
 0x52c   :  { %1871 = vmatprep.subr.bf16.mxu1 %v2150_v40 }
 0x52f   :  { %1872 = vmatpush3.bf16.msra.mxu1 %v2023_v43 }
 0x530   :  { %1873 = vmatprep.subr.bf16.mxu1 %v2150_v40 }
 0x533   :  { %1874 = vmatpush3.bf16.msra.mxu1 %v2024_v44 }
 0x5f9   :  { %v658_v16 = vpop.f32.mrb[16].mxu1 }
 0x5fa   :  { %v659_v17 = vadd.f32 %v658_v16, %v596_v15  ;;  %v1865_v18 = vpop.f32.mrb[17].mxu1 }
 0x5fb   :  { %v661_v19 = vpop.f32.mrb[18].mxu1 }
 0x5fc   :  { %v662_v20 = vadd.f32 %v661_v19, %v596_v15  ;;  %v1866_v21 = vpop.f32.mrb[19].mxu1  ;;  %v665_v22 = vsel %vm292_vm0, %v659_v17, 0.0 }
 0x5fd   :  { %666 = vadd.xlane.f32.xlu0 %v665_v22 }
 0x5fe   :  { %v668_v23 = vsel %vm292_vm0, %v662_v20, 0.0 }
 0x5ff   :  { %669 = vadd.xlane.f32.xlu1 %v668_v23 }
 0x68a   :  { %v667_v24 = vpop.xlane.xlu0 %666 }
 0x68b   :  { %v672_v25 = vmul.f32 0.015625, %v667_v24 }
 0x68c   :  { %v670_v27 = vpop.xlane.xlu1 %669 }
 0x68d   :  { %v674_v28 = vsub.f32 %v659_v17, %v672_v25  ;;  %v673_v29 = vmul.f32 0.015625, %v670_v27 }
 0x68f   :  { %v675_v30 = vsub.f32 %v662_v20, %v673_v29  ;;  %v676_v31 = vmul.f32 %v674_v28, %v674_v28 }
 0x691   :  { %v678_v32 = vsel %vm292_vm0, %v676_v31, 0.0  ;;  %v677_v33 = vmul.f32 %v675_v30, %v675_v30 }
 0x692   :  { %679 = vadd.xlane.f32.xlu0 %v678_v32  ;;  %v798_v32 = vsub.s32 5, %v2270_v39 }
 0x693   :  { %v681_v34 = vsel %vm292_vm0, %v677_v33, 0.0 }
 0x694   :  { %v799_v33 = vrot.slane %v2280_v42, %v798_v32 }
 0x696   :  { %682 = vadd.xlane.f32.xlu0 %v681_v34 }
 0x71f   :  { %v680_v45 = vpop.xlane.xlu0 %679 }
 0x720   :  { %v684_v46 = vmul.f32 0.015625, %v680_v45 }
 0x722   :  { %v686_v47 = vadd.f32 1e-05, %v684_v46 }
 0x723   :  { %v683_v48 = vpop.xlane.xlu0 %682 }
 0x724   :  { %2077 = vrsqrt.f32 %v686_v47  ;;  %v685_v49 = vmul.f32 0.015625, %v683_v48 }
 0x726   :  { %v687_v50 = vadd.f32 1e-05, %v685_v49 }
 0x728   :  { %2079 = vrsqrt.f32 %v687_v50 }
 0x72e   :  { %v2078_v54 = vpop.eup %2077 }
 0x72f   :  { %v690_v55 = vmul.f32 %v2078_v54, %v674_v28 }
 0x731   :  { %v696_v56 = vmul.f32 %v695_v52, %v690_v55 }
 0x732   :  { %v2080_v58 = vpop.eup %2079 }
 0x733   :  { %v691_v59 = vmul.f32 %v2080_v58, %v675_v30  ;;  %v702_v62 = vadd.f32 %v701_v57, %v696_v56 }
 0x735   :  { %v697_v60 = vmul.f32 %v695_v52, %v691_v59  ;;  %v2390_v1 = vadd.f32 %v702_v62, %v2263_v35  ;;  %v2026_v35 = vld [vmem:[%s2657_s1 + $0x1d0] ss:$8 sps:$4 sm:$0xff]   ;;  %v2033_v62 = vld [vmem:[%s2657_s1 + $0x240] ss:$8 sps:$4 sm:$0xff]  }
 0x736   :  { %1882 = vmatpush3.bf16.msra.mxu0 %v2026_v35  ;;  %v2039_v35 = vld [vmem:[%s2657_s1 + $0x260] ss:$8 sps:$4 sm:$0xff]  }
 0x737   :  { %v703_v0 = vadd.f32 %v701_v57, %v697_v60  ;;  %1883 = vmatprep.subr.bf16.mxu0 %v2150_v40  ;;  %v2035_v60 = vld [vmem:[%s2657_s1 + $0x244] ss:$8 sps:$4 sm:$0xff]  }
 0x738   :  { %1023 = vmatprep.subr.bf16.mxu1 %v2035_v60 }
 0x739   :  { %v2393_v2 = vadd.f32 %v703_v0, %v2265_v36  ;;  %v2027_v36 = vld [vmem:[%s2657_s1 + $0x1e0] ss:$8 sps:$4 sm:$0xff]   ;;  %v2038_v0 = vld [vmem:[%s2657_s1 + $0x254] ss:$8 sps:$4 sm:$0xff]  }
 0x73a   :  { %1884 = vmatpush3.bf16.msra.mxu0 %v2027_v36  ;;  %v2044_v36 = vld [vmem:[%s2657_s1 + $0x274] ss:$8 sps:$4 sm:$0xff]  }
 0x73b   :  { %v706_v3 = vpack.c.bf16 %v2393_v2, %v2390_v1  ;;  %1885 = vmatprep.subr.bf16.mxu0 %v2150_v40 }
 0x73d   :  { %1876 = vmatmul.mubr.msk.bf16.vlgmr.msra.gmra.mrb[20].mxu1 %vm292_vm0, %v706_v3  ;;  %v2036_v3 = vld [vmem:[%s2657_s1 + $0x250] ss:$8 sps:$4 sm:$0xff]  }
 0x73e   :  { %1055 = vmatprep.mubr.bf16.mxu1 %v2149_v26  ;;  %v2028_v26 = vld [vmem:[%s2657_s1 + $0x1f0] ss:$8 sps:$4 sm:$0xff]   ;;  %1024 = vmatpush1.bf16.msra.mxu1 %v2033_v62 }
 0x73f   :  { %1886 = vmatpush3.bf16.msra.mxu0 %v2028_v26  ;;  %1025 = vmatprep.subr.bf16.mxu1 %v2038_v0  ;;  %v2042_v26 = vld [vmem:[%s2657_s1 + $0x270] ss:$8 sps:$4 sm:$0xff]  }
 0x740   :  { %1887 = vmatprep.subr.bf16.mxu0 %v2150_v40 }
 0x742   :  { %1026 = vmatpush1.bf16.msra.mxu1 %v2036_v3 }
 0x743   :  { %1888 = vmatpush3.bf16.msra.mxu0 %v2029_v5  ;;  %1027 = vmatprep.subr.bf16.mxu1 %v2041_v4 }
 0x744   :  { %1889 = vmatprep.subr.bf16.mxu0 %v2150_v40 }
 0x746   :  { %1028 = vmatpush1.bf16.msra.mxu1 %v2039_v35 }
 0x747   :  { %1890 = vmatpush3.bf16.msra.mxu0 %v2030_v6  ;;  %1029 = vmatprep.subr.bf16.mxu1 %v2044_v36 }
 0x748   :  { %1891 = vmatprep.subr.bf16.mxu0 %v2150_v40 }
 0x74a   :  { %1030 = vmatpush1.bf16.msra.mxu1 %v2042_v26 }
 0x74b   :  { %1892 = vmatpush3.bf16.msra.mxu0 %v2031_v7  ;;  %1899 = vmatprep.subr.bf16.mxu1 %v2150_v40 }
 0x74c   :  { %1893 = vmatprep.subr.bf16.mxu0 %v2150_v40 }
 0x74f   :  { %1894 = vmatpush3.bf16.msra.mxu0 %v2032_v8 }
 0x750   :  { %1911 = vmatprep.subr.bf16.mxu0 %v2150_v40 }
 0x810   :  { %v772_v11 = vpop.f32.mrb[20].mxu1 }
 0x811   :  { %v773_v12 = vadd.f32 %v772_v11, %v710_v10  ;;  %v1877_v13 = vpop.f32.mrb[21].mxu1 }
 0x812   :  { %v775_v15 = vpop.f32.mrb[22].mxu1 }
 0x813   :  { %v1712_v16 = vmul.f32 -1.702, %v773_v12  ;;  %v776_v17 = vadd.f32 %v775_v15, %v710_v10  ;;  %v1878_v18 = vpop.f32.mrb[23].mxu1  ;;  %v923_v15 = vsub.s32 7, %v2270_v39 }
 0x815   :  { %v783_v19 = vmul.f32 1.442695, %v1712_v16  ;;  %v1713_v20 = vmul.f32 -1.702, %v776_v17 }
 0x817   :  { %2081 = vpow2.f32 %v783_v19  ;;  %v785_v21 = vmul.f32 1.442695, %v1713_v20  ;;  %v924_v19 = vrot.slane %v2280_v42, %v923_v15 }
 0x819   :  { %2083 = vpow2.f32 %v785_v21 }
 0x821   :  { %v2082_v22 = vpop.eup %2081 }
 0x822   :  { %v787_v23 = vadd.f32 1.0, %v2082_v22 }
 0x823   :  { %v2084_v24 = vpop.eup %2083 }
 0x824   :  { %2085 = vrcp.f32 %v787_v23  ;;  %v788_v25 = vadd.f32 1.0, %v2084_v24 }
 0x826   :  { %2087 = vrcp.f32 %v788_v25 }
 0x82e   :  { %v2086_v27 = vpop.eup %2085 }
 0x82f   :  { %v793_v29 = vmul.f32 %v2086_v27, %v773_v12  ;;  %v917_v12 = vsub.s32 6, %v2270_v39 }
 0x830   :  { %v2088_v28 = vpop.eup %2087 }
 0x831   :  { %v794_v30 = vmul.f32 %v2088_v28, %v776_v17  ;;  %v918_v13 = vrot.slane %v2280_v42, %v917_v12  ;;  %v2492_v42 = vld [vmem:[%s2658_s2 + $0x50] sm:$0xff] }
 0x833   :  { %v795_v31 = vpack.c.bf16 %v794_v30, %v793_v29 }
 0x835   :  { %1896 = vmatmul.mubr.bf16.vlgmr.msra.gmra.mrb[8].mxu0 %v795_v31 }
 0x836   :  { %1913 = vmatprep.mubr.msk.bf16.mxu0 %vm2151_vm1, %v2150_v40 }
 0x908   :  { %v882_v34 = vpop.f32.mrb[8].mxu0 }
 0x909   :  { %v883_v37 = vadd.f32 %v882_v34, %v799_v33  ;;  %v1897_v38 = vpop.f32.mrb[9].mxu0 }
 0x90a   :  { %v885_v43 = vpop.f32.mrb[10].mxu0 }
 0x90b   :  { %v886_v44 = vadd.f32 %v885_v43, %v799_v33  ;;  %v1898_v45 = vpop.f32.mrb[11].mxu0  ;;  %v889_v46 = vsel %vm292_vm0, %v883_v37, 0.0 }
 0x90c   :  { %890 = vadd.xlane.f32.xlu0 %v889_v46 }
 0x90d   :  { %v892_v47 = vsel %vm292_vm0, %v886_v44, 0.0 }
 0x910   :  { %893 = vadd.xlane.f32.xlu0 %v892_v47 }
 0x999   :  { %v891_v48 = vpop.xlane.xlu0 %890 }
 0x99a   :  { %v895_v49 = vmul.f32 0.015625, %v891_v48 }
 0x99c   :  { %v897_v50 = vsub.f32 %v883_v37, %v895_v49 }
 0x99d   :  { %v894_v52 = vpop.xlane.xlu0 %893 }
 0x99e   :  { %v896_v54 = vmul.f32 0.015625, %v894_v52  ;;  %v899_v55 = vmul.f32 %v897_v50, %v897_v50 }
 0x9a0   :  { %v898_v56 = vsub.f32 %v886_v44, %v896_v54  ;;  %v901_v57 = vsel %vm292_vm0, %v899_v55, 0.0 }
 0x9a1   :  { %902 = vadd.xlane.f32.xlu0 %v901_v57 }
 0x9a2   :  { %v900_v58 = vmul.f32 %v898_v56, %v898_v56 }
 0x9a4   :  { %v904_v59 = vsel %vm292_vm0, %v900_v58, 0.0 }
 0x9a5   :  { %905 = vadd.xlane.f32.xlu1 %v904_v59 }
 0xa2e   :  { %v903_v5 = vpop.xlane.xlu0 %902 }
 0xa2f   :  { %v907_v6 = vmul.f32 0.015625, %v903_v5 }
 0xa31   :  { %v909_v7 = vadd.f32 1e-05, %v907_v6 }
 0xa32   :  { %v906_v8 = vpop.xlane.xlu1 %905 }
 0xa33   :  { %2089 = vrsqrt.f32 %v909_v7  ;;  %v908_v10 = vmul.f32 0.015625, %v906_v8 }
 0xa35   :  { %v910_v11 = vadd.f32 1e-05, %v908_v10 }
 0xa37   :  { %2091 = vrsqrt.f32 %v910_v11 }
 0xa3d   :  { %v2090_v16 = vpop.eup %2089 }
 0xa3e   :  { %v913_v17 = vmul.f32 %v2090_v16, %v897_v50 }
 0xa40   :  { %v919_v18 = vmul.f32 %v918_v13, %v913_v17 }
 0xa41   :  { %v2092_v20 = vpop.eup %2091 }
 0xa42   :  { %v914_v21 = vmul.f32 %v2092_v20, %v898_v56  ;;  %v925_v23 = vadd.f32 %v924_v19, %v919_v18 }
 0xa44   :  { %v920_v22 = vmul.f32 %v918_v13, %v914_v21  ;;  %v2479_v25 = vadd.f32 %v925_v23, %v2390_v1  ;;  %v970_v1 = vld [vmem:[%s2658_s2 + $0x58] sm:$0xff] }
 0xa45   :  { %v979_v30 = vrot.slane %v970_v1, %v2275_v41 }
 0xa46   :  { %v926_v24 = vadd.f32 %v924_v19, %v920_v22 }
 0xa48   :  { %v2482_v27 = vadd.f32 %v926_v24, %v2393_v2  ;;  %v975_v2 = vrot.slane %v2492_v42, %v2275_v41 }
 0xa4a   :  { %v971_v28 = vpack.c.bf16 %v2482_v27, %v2479_v25 }
 0xa4c   :  { %1730 = vmatmul.mubr.msk.bf16.vlgmr.msra.gmra.mrb[24].mxu1 %vm292_vm0, %v971_v28 }
 0xa4d   :  { %1901 = vmatprep.mubr.msk.bf16.mxu1 %vm2151_vm1, %v2150_v40 }
 0xb1f   :  { %v1057_v29 = vpop.f32.mrb[24].mxu1 }
 0xb20   :  { %v1059_v31 = vpop.f32.mrb[25].mxu1  ;;  %v1058_v34 = vadd.f32 %v1057_v29, %v975_v2 }
 0xb21   :  { %v1061_v33 = vpop.f32.mrb[26].mxu1  ;;  %v1060_v43 = vadd.f32 %v1059_v31, %v979_v30 }
 0xb22   :  { %v1062_v37 = vadd.f32 %v1061_v33, %v975_v2  ;;  %v1063_v38 = vpop.f32.mrb[27].mxu1  ;;  %v2045_v33 = vld [vmem:[%s2657_s1 + $0x280] ss:$8 sps:$4 sm:$0xff]  }
 0xb23   :  { %v1064_v44 = vadd.f32 %v1063_v38, %v979_v30 }
 0xb24   :  { %v1066_v45 = vpack.c.bf16 %v1062_v37, %v1058_v34  ;;  %v2046_v34 = vld [vmem:[%s2657_s1 + $0x290] ss:$8 sps:$4 sm:$0xff]   ;;  %v2047_v37 = vld [vmem:[%s2657_s1 + $0x2a0] ss:$8 sps:$4 sm:$0xff]  }
 0xb25   :  { %v1067_v46 = vpack.c.bf16 %v1064_v44, %v1060_v43 }
 0xb26   :  { %1187 = vrot.lane.b32.xlu1 %v1066_v45, %s2154_s19  ;;  %1069 = vrot.lane.b32.xlu0 %v1066_v45, %s2153_s18 }
 0xb2a   :  { %1185 = vrot.lane.b32.xlu1 %v1066_v45, %s2152_s17 }
 0xb98   :  { %v1188_v47 = vpop.permute.xlu1 %1187  ;;  %v1070_v48 = vpop.permute.xlu0 %1069 }
 0xb99   :  { %v1193_v49 = vsel %vm344_vm2, %v1188_v47, 0  ;;  %v1075_v41 = vsel %vm344_vm2, %v1070_v48, 0  ;;  %v2048_v48 = vld [vmem:[%s2657_s1 + $0x2b0] ss:$8 sps:$4 sm:$0xff]  }
 0xb9a   :  { %1900 = vmatpush3.bf16.xpose.msra.mxu1 %v1075_v41  ;;  %1912 = vmatpush3.bf16.xpose.msra.mxu0 %v1193_v49 }
 0xb9b   :  { %1905 = vmatprep.subr.bf16.mxu1 %v2150_v40  ;;  %1923 = vmatprep.subr.bf16.mxu0 %v2150_v40 }
 0xb9c   :  { %v1186_v50 = vpop.permute.xlu1 %1185 }
 0xba1   :  { %1902 = vmatmul.mubr.msk.bf16.vlgmr.msra.gmra.mrb[28].mxu1 %vm344_vm2, %v1066_v45  ;;  %1914 = vmatmul.mubr.msk.bf16.vlgmr.msra.gmra.mrb[12].mxu0 %vm344_vm2, %v1186_v50 }
 0xba2   :  { %1906 = vmatpush3.bf16.msra.mxu1 %v1067_v46  ;;  %1907 = vmatprep.mubr.msk.bf16.mxu1 %vm2151_vm1, %v2150_v40 }
 0xba3   :  { %1917 = vmatprep.subr.bf16.mxu1 %v2150_v40  ;;  %1931 = vmatprep.mubr.msk.bf16.mxu0 %vm2151_vm1, %v2150_v40 }
 0xba4   :  { %1924 = vmatpush3.bf16.msra.mxu0 %v2045_v33  ;;  %v2052_v33 = vld [vmem:[%s2657_s1 + $0x2f0] ss:$8 sps:$4 sm:$0xff]  }
 0xba5   :  { %1925 = vmatprep.subr.bf16.mxu0 %v2150_v40 }
 0xba8   :  { %1926 = vmatpush3.bf16.msra.mxu0 %v2046_v34 }
 0xba9   :  { %1927 = vmatprep.subr.bf16.mxu0 %v2150_v40 }
 0xbac   :  { %1928 = vmatpush3.bf16.msra.mxu0 %v2047_v37 }
 0xbad   :  { %1929 = vmatprep.subr.bf16.mxu0 %v2150_v40 }
 0xbb0   :  { %1930 = vmatpush3.bf16.msra.mxu0 %v2048_v48 }
 0xbb1   :  { %1947 = vmatprep.subr.bf16.mxu0 %v2150_v40 }
 0xc74   :  { %v1111_v52 = vpop.f32.mrb[28].mxu1  ;;  %v1229_v54 = vpop.f32.mrb[12].mxu0 }
 0xc75   :  { %v1112_v55 = vadd.f32 %v1111_v52, %v2309_v61  ;;  %v1903_v56 = vpop.f32.mrb[29].mxu1  ;;  %v1915_v57 = vpop.f32.mrb[13].mxu0  ;;  %v1230_v60 = vadd.f32 %v1229_v54, %v2309_v61 }
 0xc76   :  { %v1114_v58 = vpop.f32.mrb[30].mxu1  ;;  %v1232_v59 = vpop.f32.mrb[14].mxu0 }
 0xc77   :  { %v1115_v62 = vadd.f32 %v1114_v58, %v2314_v63  ;;  %v1904_v0 = vpop.f32.mrb[31].mxu1  ;;  %v1916_v3 = vpop.f32.mrb[15].mxu0  ;;  %v1118_v4 = vsel %vm392_vm3, %v1112_v55, -inf  ;;  %v1233_v36 = vadd.f32 %v1232_v59, %v2314_v63  ;;  %v1236_v26 = vsel %vm392_vm3, %v1230_v60, -inf }
 0xc78   :  { %1119 = vmax.xlane.f32.xlu0 %v1118_v4 }
 0xc79   :  { %v1121_v35 = vsel %vm392_vm3, %v1115_v62, -inf  ;;  %v1239_v5 = vsel %vm392_vm3, %v1233_v36, -inf }
 0xc7a   :  { %1122 = vmax.xlane.f32.xlu1 %v1121_v35 }
 0xc7c   :  { %1237 = vmax.xlane.f32.xlu0 %v1236_v26 }
 0xc80   :  { %1240 = vmax.xlane.f32.xlu0 %v1239_v5 }
 0xc8b   :  { %1256 = vrot.lane.b32.xlu1 %v1067_v46, %s2152_s17 }
 0xd05   :  { %v1120_v61 = vpop.xlane.xlu0 %1119 }
 0xd06   :  { %v1124_v6 = vsub.f32 %v1112_v55, %v1120_v61 }
 0xd07   :  { %v1123_v7 = vpop.xlane.xlu1 %1122 }
 0xd08   :  { %v1126_v8 = vmul.f32 1.442695, %v1124_v6  ;;  %v1125_v10 = vsub.f32 %v1115_v62, %v1123_v7  ;;  %v1321_v7 = vrot.slane %v2492_v42, %v595_v14 }
 0xd09   :  { %v1238_v11 = vpop.xlane.xlu0 %1237 }
 0xd0a   :  { %v1128_v13 = vmul.f32 1.442695, %v1125_v10  ;;  %v1242_v16 = vsub.f32 %v1230_v60, %v1238_v11  ;;  %2093 = vpow2.f32 %v1126_v8 }
 0xd0b   :  { %v1257_v24 = vpop.permute.xlu1 %1256 }
 0xd0c   :  { %2095 = vpow2.f32 %v1128_v13  ;;  %v1244_v17 = vmul.f32 1.442695, %v1242_v16 }
 0xd0d   :  { %v1241_v63 = vpop.xlane.xlu0 %1240 }
 0xd0e   :  { %2097 = vpow2.f32 %v1244_v17  ;;  %v1243_v18 = vsub.f32 %v1233_v36, %v1241_v63 }
 0xd10   :  { %v1246_v19 = vmul.f32 1.442695, %v1243_v18 }
 0xd12   :  { %2099 = vpow2.f32 %v1246_v19 }
 0xd14   :  { %v2094_v20 = vpop.eup %2093 }
 0xd15   :  { %v1130_v30 = vsel %vm392_vm3, %v2094_v20, 0.0 }
 0xd16   :  { %v2096_v21 = vpop.eup %2095 }
 0xd17   :  { %v1136_v22 = vpack.c.bf16 %v2096_v21, %v2094_v20  ;;  %v1133_v31 = vsel %vm392_vm3, %v2096_v21, 0.0 }
 0xd18   :  { %v2098_v23 = vpop.eup %2097 }
 0xd19   :  { %1908 = vmatmul.mubr.msk.bf16.vlgmr.msra.gmra.mrb[32].mxu1 %vm392_vm3, %v1136_v22  ;;  %v1248_v28 = vsel %vm392_vm3, %v2098_v23, 0.0 }
 0xd1a   :  { %1918 = vmatpush3.bf16.msra.mxu1 %v1257_v24  ;;  %1249 = vadd.xlane.f32.xlu0 %v1248_v28 }
 0xd1b   :  { %1919 = vmatprep.mubr.msk.bf16.mxu1 %vm2151_vm1, %v2150_v40  ;;  %1935 = vmatprep.subr.bf16.mxu1 %v2150_v40 }
 0xd1c   :  { %v2100_v1 = vpop.eup %2099 }
 0xd1d   :  { %v1251_v2 = vsel %vm392_vm3, %v2100_v1, 0.0  ;;  %v1254_v29 = vpack.c.bf16 %v2100_v1, %v2098_v23 }
 0xd1e   :  { %1252 = vadd.xlane.f32.xlu0 %v1251_v2 }
 0xd21   :  { %1920 = vmatmul.mubr.msk.bf16.vlgmr.msra.gmra.mrb[36].mxu1 %vm392_vm3, %v1254_v29  ;;  %v2049_v29 = vld [vmem:[%s2657_s1 + $0x2c0] ss:$8 sps:$4 sm:$0xff]  }
 0xd22   :  { %1131 = vadd.xlane.f32.xlu0 %v1130_v30  ;;  %1943 = vmatprep.mubr.msk.bf16.mxu1 %vm2151_vm1, %v2150_v40  ;;  %v2050_v30 = vld [vmem:[%s2657_s1 + $0x2d0] ss:$8 sps:$4 sm:$0xff]  }
 0xd23   :  { %1936 = vmatpush3.bf16.msra.mxu1 %v2049_v29 }
 0xd24   :  { %1937 = vmatprep.subr.bf16.mxu1 %v2150_v40 }
 0xd26   :  { %1134 = vadd.xlane.f32.xlu0 %v1133_v31  ;;  %v2051_v31 = vld [vmem:[%s2657_s1 + $0x2e0] ss:$8 sps:$4 sm:$0xff]  }
 0xd27   :  { %1938 = vmatpush3.bf16.msra.mxu1 %v2050_v30 }
 0xd28   :  { %1939 = vmatprep.subr.bf16.mxu1 %v2150_v40 }
 0xd2b   :  { %1940 = vmatpush3.bf16.msra.mxu1 %v2051_v31 }
 0xd2c   :  { %1941 = vmatprep.subr.bf16.mxu1 %v2150_v40 }
 0xd2f   :  { %1942 = vmatpush3.bf16.msra.mxu1 %v2052_v33 }
 0xda7   :  { %v1250_v38 = vpop.xlane.xlu0 %1249 }
 0xda8   :  { %2101 = vrcp.f32 %v1250_v38 }
 0xdab   :  { %v1253_v43 = vpop.xlane.xlu0 %1252 }
 0xdac   :  { %2103 = vrcp.f32 %v1253_v43 }
 0xdaf   :  { %v1132_v59 = vpop.xlane.xlu0 %1131 }
 0xdb0   :  { %2105 = vrcp.f32 %v1132_v59  ;;  %v2056_v59 = vld [vmem:[%s2657_s1 + $0x330] ss:$8 sps:$4 sm:$0xff]  }
 0xdb2   :  { %v2102_v41 = vpop.eup %2101 }
 0xdb3   :  { %v1135_v60 = vpop.xlane.xlu0 %1134 }
 0xdb4   :  { %2107 = vrcp.f32 %v1135_v60  ;;  %v2057_v60 = vld [vmem:[%s2657_s1 + $0x340] ss:$8 sps:$4 sm:$0xff]  }
 0xdb6   :  { %v2104_v52 = vpop.eup %2103 }
 0xdba   :  { %v2106_v62 = vpop.eup %2105 }
 0xdbe   :  { %v2108_v0 = vpop.eup %2107 }
 0xdec   :  { %v1174_v44 = vpop.f32.mrb[32].mxu1 }
 0xded   :  { %v1909_v45 = vpop.f32.mrb[33].mxu1  ;;  %v1182_v4 = vmul.f32 %v2106_v62, %v1174_v44  ;;  %v2058_v62 = vld [vmem:[%s2657_s1 + $0x350] ss:$8 sps:$4 sm:$0xff]  }
 0xdee   :  { %v1177_v46 = vpop.f32.mrb[34].mxu1 }
 0xdef   :  { %v1910_v47 = vpop.f32.mrb[35].mxu1  ;;  %v1184_v35 = vmul.f32 %v2108_v0, %v1177_v46  ;;  %v1419_v46 = vrot.slane %v2492_v42, %v694_v51  ;;  %v2059_v0 = vld [vmem:[%s2657_s1 + $0x360] ss:$8 sps:$4 sm:$0xff]  }
 0xdf4   :  { %v1296_v49 = vpop.f32.mrb[36].mxu1 }
 0xdf5   :  { %v1921_v50 = vpop.f32.mrb[37].mxu1  ;;  %v1304_v55 = vmul.f32 %v2102_v41, %v1296_v49  ;;  %v1425_v41 = vrot.slane %v2492_v42, %v700_v53  ;;  %v2053_v53 = vld [vmem:[%s2657_s1 + $0x300] ss:$8 sps:$4 sm:$0xff]  }
 0xdf6   :  { %v1299_v54 = vpop.f32.mrb[38].mxu1 }
 0xdf7   :  { %v1306_v56 = vmul.f32 %v2104_v52, %v1299_v54  ;;  %v1922_v57 = vpop.f32.mrb[39].mxu1 }
 0xdf9   :  { %v1981_v58 = vpack.i.bf16 %v1306_v56, %v1304_v55 }
 0xdfb   :  { %1982 = vrot.lane.b32.xlu1 %v1981_v58, %s2154_s19 }
 0xe6d   :  { %v1983_v3 = vpop.permute.xlu1 %1982 }
 0xe6e   :  { %v1985_v36 = vunpack.i.h.bf16 %v1983_v3  ;;  %v1984_v26 = vunpack.i.l.bf16 %v1983_v3  ;;  %v2060_v3 = vld [vmem:[%s2657_s1 + $0x370] ss:$8 sps:$4 sm:$0xff]  }
 0xe70   :  { %v1316_v5 = vsel %vm344_vm2, %v1184_v35, %v1985_v36  ;;  %v1315_v61 = vsel %vm344_vm2, %v1182_v4, %v1984_v26  ;;  %v1434_v4 = vrot.slane %v2492_v42, %v709_v9 }
 0xe71   :  { %v1317_v6 = vpack.c.bf16 %v1316_v5, %v1315_v61 }
 0xe73   :  { %1932 = vmatmul.mubr.msk.bf16.vlgmr.msra.gmra.mrb[16].mxu0 %vm292_vm0, %v1317_v6 }
 0xe74   :  { %1963 = vmatprep.mubr.msk.bf16.mxu0 %vm2151_vm1, %v2150_v40  ;;  %1948 = vmatpush3.bf16.msra.mxu0 %v2053_v53 }
 0xe75   :  { %1949 = vmatprep.subr.bf16.mxu0 %v2150_v40 }
 0xf46   :  { %v1383_v8 = vpop.f32.mrb[16].mxu0 }
 0xf47   :  { %v1384_v10 = vadd.f32 %v1383_v8, %v1321_v7  ;;  %v1933_v11 = vpop.f32.mrb[17].mxu0 }
 0xf48   :  { %v1386_v13 = vpop.f32.mrb[18].mxu0 }
 0xf49   :  { %v1387_v16 = vadd.f32 %v1386_v13, %v1321_v7  ;;  %v1934_v17 = vpop.f32.mrb[19].mxu0  ;;  %v1390_v63 = vsel %vm292_vm0, %v1384_v10, 0.0 }
 0xf4a   :  { %1391 = vadd.xlane.f32.xlu0 %v1390_v63 }
 0xf4b   :  { %v1393_v18 = vsel %vm292_vm0, %v1387_v16, 0.0 }
 0xf4c   :  { %1394 = vadd.xlane.f32.xlu1 %v1393_v18 }
 0xfd7   :  { %v1392_v19 = vpop.xlane.xlu0 %1391 }
 0xfd8   :  { %v1396_v20 = vmul.f32 0.015625, %v1392_v19 }
 0xfd9   :  { %v1395_v21 = vpop.xlane.xlu1 %1394 }
 0xfda   :  { %v1398_v22 = vsub.f32 %v1384_v10, %v1396_v20  ;;  %v1397_v23 = vmul.f32 0.015625, %v1395_v21  ;;  %v1523_v21 = vrot.slane %v2492_v42, %v798_v32 }
 0xfdc   :  { %v1399_v24 = vsub.f32 %v1387_v16, %v1397_v23  ;;  %v1400_v28 = vmul.f32 %v1398_v22, %v1398_v22 }
 0xfde   :  { %v1402_v14 = vsel %vm292_vm0, %v1400_v28, 0.0  ;;  %v1401_v1 = vmul.f32 %v1399_v24, %v1399_v24 }
 0xfdf   :  { %1403 = vadd.xlane.f32.xlu0 %v1402_v14 }
 0xfe0   :  { %v1405_v2 = vsel %vm292_vm0, %v1401_v1, 0.0 }
 0xfe3   :  { %1406 = vadd.xlane.f32.xlu0 %v1405_v2 }
0x106c   :  { %v1404_v34 = vpop.xlane.xlu0 %1403 }
0x106d   :  { %v1408_v37 = vmul.f32 0.015625, %v1404_v34 }
0x106f   :  { %v1410_v38 = vadd.f32 1e-05, %v1408_v37 }
0x1070   :  { %v1407_v43 = vpop.xlane.xlu0 %1406 }
0x1071   :  { %2109 = vrsqrt.f32 %v1410_v38  ;;  %v1409_v44 = vmul.f32 0.015625, %v1407_v43 }
0x1073   :  { %v1411_v45 = vadd.f32 1e-05, %v1409_v44 }
0x1075   :  { %2111 = vrsqrt.f32 %v1411_v45 }
0x107b   :  { %v2110_v47 = vpop.eup %2109 }
0x107c   :  { %v1414_v48 = vmul.f32 %v2110_v47, %v1398_v22 }
0x107e   :  { %v1420_v49 = vmul.f32 %v1419_v46, %v1414_v48 }
0x107f   :  { %v2112_v50 = vpop.eup %2111 }
0x1080   :  { %v1415_v52 = vmul.f32 %v2112_v50, %v1399_v24  ;;  %v1426_v55 = vadd.f32 %v1425_v41, %v1420_v49 }
0x1082   :  { %v1421_v54 = vmul.f32 %v1419_v46, %v1415_v52  ;;  %v2585_v57 = vadd.f32 %v1426_v55, %v2479_v25  ;;  %v2054_v25 = vld [vmem:[%s2657_s1 + $0x310] ss:$8 sps:$4 sm:$0xff]   ;;  %v1642_v52 = vrot.slane %v2492_v42, %v917_v12 }
0x1083   :  { %1950 = vmatpush3.bf16.msra.mxu0 %v2054_v25 }
0x1084   :  { %v1427_v56 = vadd.f32 %v1425_v41, %v1421_v54  ;;  %1951 = vmatprep.subr.bf16.mxu0 %v2150_v40 }
0x1086   :  { %v2588_v58 = vadd.f32 %v1427_v56, %v2482_v27  ;;  %v2055_v27 = vld [vmem:[%s2657_s1 + $0x320] ss:$8 sps:$4 sm:$0xff]   ;;  %v1648_v56 = vrot.slane %v2492_v42, %v923_v15  ;;  %s2155_s1 = smov [#allocation2]  }
0x1087   :  { %1952 = vmatpush3.bf16.msra.mxu0 %v2055_v27  ;;  %s1660_s26 = sshll.u32 %s2155_s1, 4  ;;  %s1661_s26 = int_to_ptr.vmem [resolvable:$true] %s1660_s26 }
0x1088   :  { %v1430_v51 = vpack.c.bf16 %v2588_v58, %v2585_v57  ;;  %1953 = vmatprep.subr.bf16.mxu0 %v2150_v40  ;;  %s2125_s27 = scalar_lea.vmem %s1661_s26, 256  ;;  %p2130_p1 = scmp.lt.s32.totalorder %s1661_s26, %s1661_s26 }
0x1089   :  { %p2126_p0 = scmp.ne.s32.totalorder %s1661_s26, %s2125_s27  ;;  %p2131_p2 = scmp.lt.s32.totalorder %s2125_s27, %s2125_s27 }
0x108a   :  { %1944 = vmatmul.mubr.msk.bf16.vlgmr.msra.gmra.mrb[40].mxu1 %vm292_vm0, %v1430_v51 }
0x108b   :  { %1954 = vmatpush3.bf16.msra.mxu0 %v2056_v59  ;;  %p2132_p3 = por %p2131_p2, %p2130_p1 }
0x108c   :  { %1955 = vmatprep.subr.bf16.mxu0 %v2150_v40 }
0x108d   :  { %p2133_p4 = pnand %p2132_p3, %p2126_p0 }
0x108f   :  { %1956 = vmatpush3.bf16.msra.mxu0 %v2057_v60 }
0x1090   :  { %1957 = vmatprep.subr.bf16.mxu0 %v2150_v40 }
0x1093   :  { %1958 = vmatpush3.bf16.msra.mxu0 %v2058_v62 }
0x1094   :  { %1959 = vmatprep.subr.bf16.mxu0 %v2150_v40 }
0x1097   :  { %1960 = vmatpush3.bf16.msra.mxu0 %v2059_v0 }
0x1098   :  { %1961 = vmatprep.subr.bf16.mxu0 %v2150_v40 }
0x109b   :  { %1962 = vmatpush3.bf16.msra.mxu0 %v2060_v3 }
0x115d   :  { %v1496_v35 = vpop.f32.mrb[40].mxu1 }
0x115e   :  { %v1497_v36 = vadd.f32 %v1496_v35, %v1434_v4  ;;  %v1945_v26 = vpop.f32.mrb[41].mxu1 }
0x115f   :  { %v1499_v5 = vpop.f32.mrb[42].mxu1 }
0x1160   :  { %v1745_v61 = vmul.f32 -1.702, %v1497_v36  ;;  %v1500_v6 = vadd.f32 %v1499_v5, %v1434_v4  ;;  %v1946_v7 = vpop.f32.mrb[43].mxu1 }
0x1162   :  { %v1507_v8 = vmul.f32 1.442695, %v1745_v61  ;;  %v1746_v10 = vmul.f32 -1.702, %v1500_v6 }
0x1164   :  { %2113 = vpow2.f32 %v1507_v8  ;;  %v1509_v40 = vmul.f32 1.442695, %v1746_v10 }
0x1166   :  { %2115 = vpow2.f32 %v1509_v40 }
0x116e   :  { %v2114_v11 = vpop.eup %2113 }
0x116f   :  { %v1511_v13 = vadd.f32 1.0, %v2114_v11 }
0x1170   :  { %v2116_v16 = vpop.eup %2115 }
0x1171   :  { %2117 = vrcp.f32 %v1511_v13  ;;  %v1512_v17 = vadd.f32 1.0, %v2116_v16 }
0x1173   :  { %2119 = vrcp.f32 %v1512_v17 }
0x117b   :  { %v2118_v63 = vpop.eup %2117 }
0x117c   :  { %v1517_v18 = vmul.f32 %v2118_v63, %v1497_v36 }
0x117d   :  { %v2120_v9 = vpop.eup %2119 }
0x117e   :  { %v1518_v19 = vmul.f32 %v2120_v9, %v1500_v6 }
0x1180   :  { %v1519_v20 = vpack.c.bf16 %v1518_v19, %v1517_v18 }
0x1182   :  { %1964 = vmatmul.mubr.bf16.vlgmr.msra.gmra.mrb[20].mxu0 %v1519_v20 }
0x1255   :  { %v1606_v22 = vpop.f32.mrb[20].mxu0 }
0x1256   :  { %v1607_v23 = vadd.f32 %v1606_v22, %v1523_v21  ;;  %v1965_v24 = vpop.f32.mrb[21].mxu0 }
0x1257   :  { %v1609_v28 = vpop.f32.mrb[22].mxu0 }
0x1258   :  { %v1610_v14 = vadd.f32 %v1609_v28, %v1523_v21  ;;  %v1966_v1 = vpop.f32.mrb[23].mxu0  ;;  %v1613_v2 = vsel %vm292_vm0, %v1607_v23, 0.0 }
0x1259   :  { %1614 = vadd.xlane.f32.xlu0 %v1613_v2 }
0x125a   :  { %v1616_v29 = vsel %vm292_vm0, %v1610_v14, 0.0 }
0x125d   :  { %1617 = vadd.xlane.f32.xlu0 %v1616_v29 }
0x12e6   :  { %v1615_v30 = vpop.xlane.xlu0 %1614 }
0x12e7   :  { %v1619_v31 = vmul.f32 0.015625, %v1615_v30 }
0x12e9   :  { %v1621_v33 = vsub.f32 %v1607_v23, %v1619_v31 }
0x12ea   :  { %v1618_v34 = vpop.xlane.xlu0 %1617 }
0x12eb   :  { %v1620_v37 = vmul.f32 0.015625, %v1618_v34  ;;  %v1623_v38 = vmul.f32 %v1621_v33, %v1621_v33 }
0x12ed   :  { %v1622_v43 = vsub.f32 %v1610_v14, %v1620_v37  ;;  %v1625_v32 = vsel %vm292_vm0, %v1623_v38, 0.0 }
0x12ee   :  { %1626 = vadd.xlane.f32.xlu0 %v1625_v32 }
0x12ef   :  { %v1624_v44 = vmul.f32 %v1622_v43, %v1622_v43 }
0x12f1   :  { %v1628_v45 = vsel %vm292_vm0, %v1624_v44, 0.0 }
0x12f2   :  { %1629 = vadd.xlane.f32.xlu0 %v1628_v45 }
0x137b   :  { %v1627_v46 = vpop.xlane.xlu0 %1626 }
0x137c   :  { %v1631_v47 = vmul.f32 0.015625, %v1627_v46 }
0x137e   :  { %v1633_v48 = vadd.f32 1e-05, %v1631_v47 }
0x137f   :  { %v1630_v49 = vpop.xlane.xlu0 %1629 }
0x1380   :  { %2121 = vrsqrt.f32 %v1633_v48  ;;  %v1632_v41 = vmul.f32 0.015625, %v1630_v49 }
0x1382   :  { %v1634_v50 = vadd.f32 1e-05, %v1632_v41 }
0x1384   :  { %2123 = vrsqrt.f32 %v1634_v50 }
0x138a   :  { %v2122_v54 = vpop.eup %2121 }
0x138b   :  { %v1637_v55 = vmul.f32 %v2122_v54, %v1621_v33 }
0x138d   :  { %v1643_v51 = vmul.f32 %v1642_v52, %v1637_v55 }
0x138e   :  { %v2124_v53 = vpop.eup %2123 }
0x138f   :  { %v1638_v25 = vmul.f32 %v2124_v53, %v1622_v43  ;;  %v1649_v27 = vadd.f32 %v1648_v56, %v1643_v51 }
0x1391   :  { %v1644_v59 = vmul.f32 %v1642_v52, %v1638_v25  ;;  %v1651_v60 = vadd.f32 %v1649_v27, %v2585_v57 }
0x1393   :  { %v1650_v62 = vadd.f32 %v1648_v56, %v1644_v59  ;;  %1653 = vst.msk [vmem:[#allocation2] sm:$0xff] %vm292_vm0, %v1651_v60 }
0x1395   :  { %v1652_v12 = vadd.f32 %v1650_v62, %v2588_v58 }
0x1397   :  { %1654 = vst.msk [vmem:[#allocation2 + $0x8] sm:$0xff] %vm292_vm0, %v1652_v12 }
0x1398   :  { %2136 = shalt.err (!%p2133_p4)
}
0x1399   :  { %s2137_s30 = scalar_lea.hbm %s2659_s3, 256 }
0x139a   :  { %p2138_p5 = scmp.ne.s32.totalorder %s2659_s3, %s2137_s30  ;;  %p2141_p6 = scmp.lt.u32.totalorder %s2137_s30, %s2659_s3 }
0x139c   :  { %p2143_p7 = pnand %p2141_p6, %p2138_p5 }
0x139e   :  { %2146 = shalt.err (!%p2143_p7)
}
0x139f   :  { %s2156_s7 = smov 128   ;;  %s2157_s8 = smov 8  }
0x13a0   :  { %1666 = dma.vmem_to_hbm [thread:$0]  %s1661_s26, 256, %s2659_s3, [#allocation3], %s2156_s7, %s2156_s7, %s2157_s8  }
0x13a1   :  { %2147 = dma.done.wait [#allocation3], 256  }
0x13a2   :  { %2148 = vsyncadd [#allocation3], 4294967040 }
0x13a3   :  { %1670 = vsyncpa [#allocation3], 1 }

</bundles_post_ra>
